<compile_context>
chip_gen: v7x
topology: tpu7x:2x2x1
jax: 0.10.0
libtpu: 0.0.40
codegen_flags: <defaults>
</compile_context>

<pallas_src>
import math

import jax
import jax.numpy as jnp
from jax.experimental import pallas as pl
from jax.experimental.pallas import tpu as pltpu

# ---- problem sizes (small, consistent with the module) -----------------------------
B, S, H = 2, 16, 32          # batch, sequence, hidden_size
BS = B * S                   # flattened token rows
MLP_DIM = 64                 # mlp_dim
NUM_HEADS = 4                # num_heads
HEAD_DIM = H // NUM_HEADS
LORA_R = 4                   # r
LORA_ALPHA = 1               # lora_alpha
LORA_SCALING = LORA_ALPHA / LORA_R
EPS = 1e-5                   # nn.LayerNorm default eps
SCALE = HEAD_DIM ** -0.5     # SABlock scale

# ---- parameter-slab layout (one lane-dense (SLAB_ROWS, 128) f32 array, one DMA) -----
# Every region starts at lane 0 and at a sublane offset that is a multiple of 8.
ROW_WFUSED = 0               # (H + R, 3H) = (36, 96)  -- [wqkv_scaled ; wb_scaled]
ROW_WA     = 40              # (H, R)      = (32, 4)   -- LoRA down-projection A
ROW_WPROJ  = 72              # (H, H)      = (32, 32)  -- attention out_proj
ROW_WM1    = 104             # (H, MLP)    = (32, 64)
ROW_WM2    = 136             # (MLP, H)    = (64, 32)
ROW_MASK   = 200             # (BS, BS)    = (32, 32)  -- additive 0 / -1e30 batch mask
ROW_VECS   = 232             # 7 rows: g1, b1, bproj, g2, b2, bm1, bm2
SLAB_ROWS  = 240
SLAB_LANES = 128


# ---- elementwise helpers (shared by kernel and JAX reference) -----------------------
def _erf(x):
    # Abramowitz & Stegun 7.1.26 (|err| < 1.5e-7) -- matches torch nn.GELU() exact erf
    # to f32 precision using only VPU/EUP-friendly ops.
    a = jnp.abs(x)
    t = 1.0 / (1.0 + 0.3275911 * a)
    poly = ((((1.061405429 * t - 1.453152027) * t + 1.421413741) * t
             - 0.284496736) * t + 0.254829592) * t
    y = 1.0 - poly * jnp.exp(-a * a)
    return jnp.where(x >= 0, y, -y)


def _gelu_exact(x):
    return 0.5 * x * (1.0 + _erf(x * (1.0 / math.sqrt(2.0))))


def _layernorm(x, gamma, beta):
    mean = jnp.mean(x, axis=-1, keepdims=True)
    var = jnp.mean((x - mean) ** 2, axis=-1, keepdims=True)
    return (x - mean) * jax.lax.rsqrt(var + EPS) * gamma + beta


# ---- the Pallas kernel: whole (B*S, H) problem in one invocation --------------------
def block_kernel(x_ref, slab_ref, o_ref):
    x = x_ref[...]                                                    # (BS, H) f32

    # ---- static slices of the fused operand slab (zero-cost views, one DMA) ---------
    g1    = slab_ref[ROW_VECS + 0:ROW_VECS + 1, :H]
    b1    = slab_ref[ROW_VECS + 1:ROW_VECS + 2, :H]
    bproj = slab_ref[ROW_VECS + 2:ROW_VECS + 3, :H]
    g2    = slab_ref[ROW_VECS + 3:ROW_VECS + 4, :H]
    b2    = slab_ref[ROW_VECS + 4:ROW_VECS + 5, :H]
    bm1   = slab_ref[ROW_VECS + 5:ROW_VECS + 6, :MLP_DIM]
    bm2   = slab_ref[ROW_VECS + 6:ROW_VECS + 7, :H]

    w_fused = slab_ref[ROW_WFUSED:ROW_WFUSED + H + LORA_R, :3 * H]    # (36, 96)
    wa      = slab_ref[ROW_WA:ROW_WA + H, :LORA_R]                    # (32, 4)
    wproj   = slab_ref[ROW_WPROJ:ROW_WPROJ + H, :H]                   # (32, 32)
    wm1     = slab_ref[ROW_WM1:ROW_WM1 + H, :MLP_DIM]                 # (32, 64)
    wm2     = slab_ref[ROW_WM2:ROW_WM2 + MLP_DIM, :H]                 # (64, 32)
    mask    = slab_ref[ROW_MASK:ROW_MASK + BS, :BS]                   # (32, 32)

    # ---- x = x + Lora_SABlock(norm1(x)) ---------------------------------------------
    xn = _layernorm(x, g1, b1)                                        # (BS, H)

    # shared LoRA down-projection; alpha/r (and SCALE for q) pre-folded into w_fused
    lora_mid = jnp.dot(xn, wa, preferred_element_type=jnp.float32)    # (BS, R)

    # ONE fused matmul produces q/k/v for all heads: [xn | lora_mid] @ [wqkv ; wb]
    z = jnp.concatenate([xn, lora_mid], axis=1)                       # (BS, H+R) = (32, 36)
    qkv = jnp.dot(z, w_fused, preferred_element_type=jnp.float32)     # (BS, 3H)  = (32, 96)
    q = qkv[:, 0 * H:1 * H]
    k = qkv[:, 1 * H:2 * H]
    v = qkv[:, 2 * H:3 * H]

    # per-head scores (block-diagonal additive mask kills cross-batch attention),
    # stacked on the sublane axis for ONE batched softmax pass over a (128, 32) tile.
    s_list = []
    for n in range(NUM_HEADS):                                        # unrolled, static slices
        lo, hi = n * HEAD_DIM, (n + 1) * HEAD_DIM
        s_n = jax.lax.dot_general(q[:, lo:hi], k[:, lo:hi],
                                  (((1,), (1,)), ((), ())),
                                  preferred_element_type=jnp.float32)  # (BS, BS)
        s_list.append(s_n + mask)
    s_all = jnp.concatenate(s_list, axis=0)                           # (NUM_HEADS*BS, BS)
    s_all = s_all - jnp.max(s_all, axis=-1, keepdims=True)
    p_all = jnp.exp(s_all)
    p_all = p_all * pl.reciprocal(jnp.sum(p_all, axis=-1, keepdims=True), approx=False)

    # per-head attention outputs, lane-concatenated, then ONE matmul vs the unsplit wproj
    o_list = []
    for n in range(NUM_HEADS):
        lo, hi = n * HEAD_DIM, (n + 1) * HEAD_DIM
        p_n = p_all[n * BS:(n + 1) * BS, :]                           # (BS, BS)
        o_list.append(jnp.dot(p_n, v[:, lo:hi],
                              preferred_element_type=jnp.float32))    # (BS, D)
    o_cat = jnp.concatenate(o_list, axis=1)                           # (BS, H)
    attn = jnp.dot(o_cat, wproj, preferred_element_type=jnp.float32)  # (BS, H)

    x1 = x + attn + bproj                                             # residual 1

    # ---- x = x + MLPBlock(norm2(x)) ---------------------------------------------------
    xn2 = _layernorm(x1, g2, b2)
    m = jnp.dot(xn2, wm1, preferred_element_type=jnp.float32) + bm1
    m = _gelu_exact(m)
    m = jnp.dot(m, wm2, preferred_element_type=jnp.float32) + bm2

    o_ref[...] = (x1 + m).astype(o_ref.dtype)


# ---- host-side operand preparation (called ONCE, outside the per-call jit path) -----
def prepare_operands(p):
    # qkv weight (H, 3H), columns ordered (q|k|v), each block ordered (head, head_dim).
    wqkv = p["wqkv"]
    wq = wqkv[:, 0 * H:1 * H] * SCALE                 # fold attention scale into q
    wk = wqkv[:, 1 * H:2 * H]
    wv = wqkv[:, 2 * H:3 * H]

    wb = p["wb"] * LORA_SCALING                       # fold LoRA alpha/r into B
    wbq = wb[:, 0 * H:1 * H] * SCALE
    wbk = wb[:, 1 * H:2 * H]
    wbv = wb[:, 2 * H:3 * H]

    # fused input-projection weight: [wqkv_scaled ; wb_scaled] -> (H + R, 3H)
    w_fused = jnp.concatenate(
        [jnp.concatenate([wq, wk, wv], axis=1),
         jnp.concatenate([wbq, wbk, wbv], axis=1)], axis=0)

    # additive block-diagonal batch mask (0 within a batch element, -1e30 across)
    ri = jnp.arange(BS)[:, None] // S
    ci = jnp.arange(BS)[None, :] // S
    mask = jnp.where(ri == ci, 0.0, -1e30).astype(jnp.float32)

    slab = jnp.zeros((SLAB_ROWS, SLAB_LANES), jnp.float32)
    slab = slab.at[ROW_WFUSED:ROW_WFUSED + H + LORA_R, :3 * H].set(w_fused)
    slab = slab.at[ROW_WA:ROW_WA + H, :LORA_R].set(p["wa"])
    slab = slab.at[ROW_WPROJ:ROW_WPROJ + H, :H].set(p["wproj"])
    slab = slab.at[ROW_WM1:ROW_WM1 + H, :MLP_DIM].set(p["wm1"])
    slab = slab.at[ROW_WM2:ROW_WM2 + MLP_DIM, :H].set(p["wm2"])
    slab = slab.at[ROW_MASK:ROW_MASK + BS, :BS].set(mask)
    slab = slab.at[ROW_VECS + 0, :H].set(p["g1"])
    slab = slab.at[ROW_VECS + 1, :H].set(p["b1"])
    slab = slab.at[ROW_VECS + 2, :H].set(p["bproj"])
    slab = slab.at[ROW_VECS + 3, :H].set(p["g2"])
    slab = slab.at[ROW_VECS + 4, :H].set(p["b2"])
    slab = slab.at[ROW_VECS + 5, :MLP_DIM].set(p["bm1"])
    slab = slab.at[ROW_VECS + 6, :H].set(p["bm2"])
    return slab


@jax.jit
def lora_transformer_block(x, slab):
    # slab is the pre-packed (cached) parameter slab from prepare_operands().
    x2 = x.reshape(BS, H)                             # free row-major flatten
    vmem = pl.BlockSpec(memory_space=pltpu.MemorySpace.VMEM)
    y = pl.pallas_call(
        block_kernel,
        out_shape=jax.ShapeDtypeStruct((BS, H), x.dtype),
        in_specs=[vmem, vmem],                        # whole arrays, single invocation
        out_specs=vmem,
    )(x2, slab)
    return y.reshape(B, S, H)


# ---- pure-JAX reference (module semantics, no Pallas) --------------------------------
def reference(x, p):
    xn = _layernorm(x, p["g1"], p["b1"])
    qkv = xn @ p["wqkv"] + LORA_SCALING * ((xn @ p["wa"]) @ p["wb"])          # (B,S,3H)

    def split(t):  # (B,S,H) -> (B, heads, S, head_dim)
        return t.reshape(B, S, NUM_HEADS, HEAD_DIM).transpose(0, 2, 1, 3)

    q = split(qkv[..., 0 * H:1 * H])
    k = split(qkv[..., 1 * H:2 * H])
    v = split(qkv[..., 2 * H:3 * H])
    s = jnp.einsum("bnqd,bnkd->bnqk", q, k) * SCALE
    a = jax.nn.softmax(s, axis=-1)
    o = jnp.einsum("bnqk,bnkd->bnqd", a, v).transpose(0, 2, 1, 3).reshape(B, S, H)
    x1 = x + (o @ p["wproj"] + p["bproj"])
    m = _gelu_exact(_layernorm(x1, p["g2"], p["b2"]) @ p["wm1"] + p["bm1"])
    m = m @ p["wm2"] + p["bm2"]
    return x1 + m


def init_params(key):
    ks = jax.random.split(key, 9)
    std = 0.02
    f32 = jnp.float32
    return {
        "g1": jnp.ones((H,), f32), "b1": jnp.zeros((H,), f32),
        "wqkv": std * jax.random.normal(ks[0], (H, 3 * H), f32),
        "wa": std * jax.random.normal(ks[1], (H, LORA_R), f32),
        # LoRA B is zero-initialized in the module; random here so the LoRA path is
        # actually exercised by the correctness check (forward semantics are the same).
        "wb": std * jax.random.normal(ks[2], (LORA_R, 3 * H), f32),
        "wproj": std * jax.random.normal(ks[3], (H, H), f32),
        "bproj": std * jax.random.normal(ks[4], (H,), f32),
        "g2": jnp.ones((H,), f32), "b2": jnp.zeros((H,), f32),
        "wm1": std * jax.random.normal(ks[5], (H, MLP_DIM), f32),
        "bm1": std * jax.random.normal(ks[6], (MLP_DIM,), f32),
        "wm2": std * jax.random.normal(ks[7], (MLP_DIM, H), f32),
        "bm2": std * jax.random.normal(ks[8], (H,), f32),
    }


if __name__ == "__main__":
    key = jax.random.PRNGKey(0)
    kx, kp = jax.random.split(key)
    x = jax.random.normal(kx, (B, S, H), jnp.float32)
    params = init_params(kp)

    # one-time (cached) operand repacking -- hoisted out of the forward path
    slab = jax.block_until_ready(prepare_operands(params))

    out = jax.block_until_ready(lora_transformer_block(x, slab))
    ref = reference(x, params)

    assert out.shape == (B, S, H)
    # exact softmax reciprocal is used; measured max-abs error vs the reference is ~1e-6.
    err = float(jnp.max(jnp.abs(out - ref)))
    assert jnp.allclose(out, ref, rtol=1e-3, atol=1e-3), f"mismatch vs reference: {err}"

    print("KERNEL_OK")
</pallas_src>

<mosaic_0001>
module attributes {stable_mosaic.version = 11 : i64} {
  func.func @block_kernel(%arg0: memref<32x32xf32, #tpu.memory_space<vmem>>, %arg1: memref<240x128xf32, #tpu.memory_space<vmem>>, %arg2: memref<32x32xf32, #tpu.memory_space<vmem>>) attributes {dimension_semantics = [], scalar_prefetch = 0 : i64, scratch_operands = 0 : i64, tpu.core_type = #tpu.core_type<tc>} {
    %c0 = arith.constant 0 : index
    %c0_0 = arith.constant 0 : index
    %0 = vector.load %arg0[%c0, %c0_0] : memref<32x32xf32, #tpu.memory_space<vmem>>, vector<32x32xf32>
    %c232 = arith.constant 232 : index
    %c0_1 = arith.constant 0 : index
    %1 = vector.load %arg1[%c232, %c0_1] : memref<240x128xf32, #tpu.memory_space<vmem>>, vector<1x32xf32>
    %c233 = arith.constant 233 : index
    %c0_2 = arith.constant 0 : index
    %2 = vector.load %arg1[%c233, %c0_2] : memref<240x128xf32, #tpu.memory_space<vmem>>, vector<1x32xf32>
    %c234 = arith.constant 234 : index
    %c0_3 = arith.constant 0 : index
    %3 = vector.load %arg1[%c234, %c0_3] : memref<240x128xf32, #tpu.memory_space<vmem>>, vector<1x32xf32>
    %c235 = arith.constant 235 : index
    %c0_4 = arith.constant 0 : index
    %4 = vector.load %arg1[%c235, %c0_4] : memref<240x128xf32, #tpu.memory_space<vmem>>, vector<1x32xf32>
    %c236 = arith.constant 236 : index
    %c0_5 = arith.constant 0 : index
    %5 = vector.load %arg1[%c236, %c0_5] : memref<240x128xf32, #tpu.memory_space<vmem>>, vector<1x32xf32>
    %c237 = arith.constant 237 : index
    %c0_6 = arith.constant 0 : index
    %6 = vector.load %arg1[%c237, %c0_6] : memref<240x128xf32, #tpu.memory_space<vmem>>, vector<1x64xf32>
    %c238 = arith.constant 238 : index
    %c0_7 = arith.constant 0 : index
    %7 = vector.load %arg1[%c238, %c0_7] : memref<240x128xf32, #tpu.memory_space<vmem>>, vector<1x32xf32>
    %c0_8 = arith.constant 0 : index
    %c0_9 = arith.constant 0 : index
    %8 = vector.load %arg1[%c0_8, %c0_9] : memref<240x128xf32, #tpu.memory_space<vmem>>, vector<36x96xf32>
    %c40 = arith.constant 40 : index
    %c0_10 = arith.constant 0 : index
    %9 = vector.load %arg1[%c40, %c0_10] : memref<240x128xf32, #tpu.memory_space<vmem>>, vector<32x4xf32>
    %c72 = arith.constant 72 : index
    %c0_11 = arith.constant 0 : index
    %10 = vector.load %arg1[%c72, %c0_11] : memref<240x128xf32, #tpu.memory_space<vmem>>, vector<32x32xf32>
    %c104 = arith.constant 104 : index
    %c0_12 = arith.constant 0 : index
    %11 = vector.load %arg1[%c104, %c0_12] : memref<240x128xf32, #tpu.memory_space<vmem>>, vector<32x64xf32>
    %c136 = arith.constant 136 : index
    %c0_13 = arith.constant 0 : index
    %12 = vector.load %arg1[%c136, %c0_13] : memref<240x128xf32, #tpu.memory_space<vmem>>, vector<64x32xf32>
    %c200 = arith.constant 200 : index
    %c0_14 = arith.constant 0 : index
    %13 = vector.load %arg1[%c200, %c0_14] : memref<240x128xf32, #tpu.memory_space<vmem>>, vector<32x32xf32>
    %cst = arith.constant dense<0.000000e+00> : vector<32xf32>
    %14 = vector.multi_reduction <add>, %0, %cst [1] : vector<32x32xf32> to vector<32xf32>
    %15 = vector.shape_cast %14 : vector<32xf32> to vector<32x1xf32>
    %cst_15 = arith.constant 3.200000e+01 : f32
    %16 = vector.broadcast %cst_15 : f32 to vector<32x1xf32>
    %17 = arith.divf %15, %16 : vector<32x1xf32>
    %18 = vector.broadcast %17 : vector<32x1xf32> to vector<32x32xf32>
    %19 = arith.subf %0, %18 : vector<32x32xf32>
    %20 = arith.mulf %19, %19 : vector<32x32xf32>
    %cst_16 = arith.constant dense<0.000000e+00> : vector<32xf32>
    %21 = vector.multi_reduction <add>, %20, %cst_16 [1] : vector<32x32xf32> to vector<32xf32>
    %22 = vector.shape_cast %21 : vector<32xf32> to vector<32x1xf32>
    %cst_17 = arith.constant 3.200000e+01 : f32
    %23 = vector.broadcast %cst_17 : f32 to vector<32x1xf32>
    %24 = arith.divf %22, %23 : vector<32x1xf32>
    %25 = vector.broadcast %17 : vector<32x1xf32> to vector<32x32xf32>
    %26 = arith.subf %0, %25 : vector<32x32xf32>
    %cst_18 = arith.constant 9.99999974E-6 : f32
    %27 = vector.broadcast %cst_18 : f32 to vector<32x1xf32>
    %28 = arith.addf %24, %27 : vector<32x1xf32>
    %29 = math.rsqrt %28 : vector<32x1xf32>
    %30 = vector.broadcast %29 : vector<32x1xf32> to vector<32x32xf32>
    %31 = arith.mulf %26, %30 : vector<32x32xf32>
    %32 = vector.broadcast %1 : vector<1x32xf32> to vector<32x32xf32>
    %33 = arith.mulf %31, %32 : vector<32x32xf32>
    %34 = vector.broadcast %2 : vector<1x32xf32> to vector<32x32xf32>
    %35 = arith.addf %33, %34 : vector<32x32xf32>
    %cst_19 = arith.constant dense<0.000000e+00> : vector<32x4xf32>
    %36 = tpu.matmul %35, %9, %cst_19 {dimension_numbers = #tpu.dot_dimension_numbers<[1], [0], [0], [1], [0, 0, 1, 1], [], []>} : vector<32x32xf32>, vector<32x4xf32>, vector<32x4xf32> -> vector<32x4xf32>
    %37 = tpu.concatenate %35, %36 in 1 : vector<32x32xf32>, vector<32x4xf32> -> vector<32x36xf32>
    %cst_20 = arith.constant dense<0.000000e+00> : vector<32x96xf32>
    %38 = tpu.matmul %37, %8, %cst_20 {dimension_numbers = #tpu.dot_dimension_numbers<[1], [0], [0], [1], [0, 0, 1, 1], [], []>} : vector<32x36xf32>, vector<36x96xf32>, vector<32x96xf32> -> vector<32x96xf32>
    %39 = vector.extract_strided_slice %38 {offsets = [0, 0], sizes = [32, 32], strides = [1, 1]} : vector<32x96xf32> to vector<32x32xf32>
    %40 = vector.extract_strided_slice %38 {offsets = [0, 32], sizes = [32, 32], strides = [1, 1]} : vector<32x96xf32> to vector<32x32xf32>
    %41 = vector.extract_strided_slice %38 {offsets = [0, 64], sizes = [32, 32], strides = [1, 1]} : vector<32x96xf32> to vector<32x32xf32>
    %42 = vector.extract_strided_slice %39 {offsets = [0, 0], sizes = [32, 8], strides = [1, 1]} : vector<32x32xf32> to vector<32x8xf32>
    %43 = vector.extract_strided_slice %40 {offsets = [0, 0], sizes = [32, 8], strides = [1, 1]} : vector<32x32xf32> to vector<32x8xf32>
    %cst_21 = arith.constant dense<0.000000e+00> : vector<32x32xf32>
    %44 = tpu.matmul %42, %43, %cst_21 {dimension_numbers = #tpu.dot_dimension_numbers<[1], [1], [0], [0], [0, 0, 1, 0], [], []>} : vector<32x8xf32>, vector<32x8xf32>, vector<32x32xf32> -> vector<32x32xf32>
    %45 = arith.addf %44, %13 : vector<32x32xf32>
    %46 = vector.extract_strided_slice %39 {offsets = [0, 8], sizes = [32, 8], strides = [1, 1]} : vector<32x32xf32> to vector<32x8xf32>
    %47 = vector.extract_strided_slice %40 {offsets = [0, 8], sizes = [32, 8], strides = [1, 1]} : vector<32x32xf32> to vector<32x8xf32>
    %cst_22 = arith.constant dense<0.000000e+00> : vector<32x32xf32>
    %48 = tpu.matmul %46, %47, %cst_22 {dimension_numbers = #tpu.dot_dimension_numbers<[1], [1], [0], [0], [0, 0, 1, 0], [], []>} : vector<32x8xf32>, vector<32x8xf32>, vector<32x32xf32> -> vector<32x32xf32>
    %49 = arith.addf %48, %13 : vector<32x32xf32>
    %50 = vector.extract_strided_slice %39 {offsets = [0, 16], sizes = [32, 8], strides = [1, 1]} : vector<32x32xf32> to vector<32x8xf32>
    %51 = vector.extract_strided_slice %40 {offsets = [0, 16], sizes = [32, 8], strides = [1, 1]} : vector<32x32xf32> to vector<32x8xf32>
    %cst_23 = arith.constant dense<0.000000e+00> : vector<32x32xf32>
    %52 = tpu.matmul %50, %51, %cst_23 {dimension_numbers = #tpu.dot_dimension_numbers<[1], [1], [0], [0], [0, 0, 1, 0], [], []>} : vector<32x8xf32>, vector<32x8xf32>, vector<32x32xf32> -> vector<32x32xf32>
    %53 = arith.addf %52, %13 : vector<32x32xf32>
    %54 = vector.extract_strided_slice %39 {offsets = [0, 24], sizes = [32, 8], strides = [1, 1]} : vector<32x32xf32> to vector<32x8xf32>
    %55 = vector.extract_strided_slice %40 {offsets = [0, 24], sizes = [32, 8], strides = [1, 1]} : vector<32x32xf32> to vector<32x8xf32>
    %cst_24 = arith.constant dense<0.000000e+00> : vector<32x32xf32>
    %56 = tpu.matmul %54, %55, %cst_24 {dimension_numbers = #tpu.dot_dimension_numbers<[1], [1], [0], [0], [0, 0, 1, 0], [], []>} : vector<32x8xf32>, vector<32x8xf32>, vector<32x32xf32> -> vector<32x32xf32>
    %57 = arith.addf %56, %13 : vector<32x32xf32>
    %58 = tpu.concatenate %45, %49, %53, %57 in 0 : vector<32x32xf32>, vector<32x32xf32>, vector<32x32xf32>, vector<32x32xf32> -> vector<128x32xf32>
    %cst_25 = arith.constant dense<0xFF800000> : vector<128xf32>
    %59 = vector.multi_reduction <maximumf>, %58, %cst_25 [1] : vector<128x32xf32> to vector<128xf32>
    %60 = vector.shape_cast %59 : vector<128xf32> to vector<128x1xf32>
    %61 = vector.broadcast %60 : vector<128x1xf32> to vector<128x32xf32>
    %62 = arith.subf %58, %61 : vector<128x32xf32>
    %63 = math.exp %62 : vector<128x32xf32>
    %cst_26 = arith.constant dense<0.000000e+00> : vector<128xf32>
    %64 = vector.multi_reduction <add>, %63, %cst_26 [1] : vector<128x32xf32> to vector<128xf32>
    %65 = vector.shape_cast %64 : vector<128xf32> to vector<128x1xf32>
    %66 = tpu.reciprocal %65 : vector<128x1xf32> -> vector<128x1xf32>
    %67 = vector.broadcast %66 : vector<128x1xf32> to vector<128x32xf32>
    %68 = arith.mulf %63, %67 : vector<128x32xf32>
    %69 = vector.extract_strided_slice %68 {offsets = [0, 0], sizes = [32, 32], strides = [1, 1]} : vector<128x32xf32> to vector<32x32xf32>
    %70 = vector.extract_strided_slice %41 {offsets = [0, 0], sizes = [32, 8], strides = [1, 1]} : vector<32x32xf32> to vector<32x8xf32>
    %cst_27 = arith.constant dense<0.000000e+00> : vector<32x8xf32>
    %71 = tpu.matmul %69, %70, %cst_27 {dimension_numbers = #tpu.dot_dimension_numbers<[1], [0], [0], [1], [0, 0, 1, 1], [], []>} : vector<32x32xf32>, vector<32x8xf32>, vector<32x8xf32> -> vector<32x8xf32>
    %72 = vector.extract_strided_slice %68 {offsets = [32, 0], sizes = [32, 32], strides = [1, 1]} : vector<128x32xf32> to vector<32x32xf32>
    %73 = vector.extract_strided_slice %41 {offsets = [0, 8], sizes = [32, 8], strides = [1, 1]} : vector<32x32xf32> to vector<32x8xf32>
    %cst_28 = arith.constant dense<0.000000e+00> : vector<32x8xf32>
    %74 = tpu.matmul %72, %73, %cst_28 {dimension_numbers = #tpu.dot_dimension_numbers<[1], [0], [0], [1], [0, 0, 1, 1], [], []>} : vector<32x32xf32>, vector<32x8xf32>, vector<32x8xf32> -> vector<32x8xf32>
    %75 = vector.extract_strided_slice %68 {offsets = [64, 0], sizes = [32, 32], strides = [1, 1]} : vector<128x32xf32> to vector<32x32xf32>
    %76 = vector.extract_strided_slice %41 {offsets = [0, 16], sizes = [32, 8], strides = [1, 1]} : vector<32x32xf32> to vector<32x8xf32>
    %cst_29 = arith.constant dense<0.000000e+00> : vector<32x8xf32>
    %77 = tpu.matmul %75, %76, %cst_29 {dimension_numbers = #tpu.dot_dimension_numbers<[1], [0], [0], [1], [0, 0, 1, 1], [], []>} : vector<32x32xf32>, vector<32x8xf32>, vector<32x8xf32> -> vector<32x8xf32>
    %78 = vector.extract_strided_slice %68 {offsets = [96, 0], sizes = [32, 32], strides = [1, 1]} : vector<128x32xf32> to vector<32x32xf32>
    %79 = vector.extract_strided_slice %41 {offsets = [0, 24], sizes = [32, 8], strides = [1, 1]} : vector<32x32xf32> to vector<32x8xf32>
    %cst_30 = arith.constant dense<0.000000e+00> : vector<32x8xf32>
    %80 = tpu.matmul %78, %79, %cst_30 {dimension_numbers = #tpu.dot_dimension_numbers<[1], [0], [0], [1], [0, 0, 1, 1], [], []>} : vector<32x32xf32>, vector<32x8xf32>, vector<32x8xf32> -> vector<32x8xf32>
    %81 = tpu.concatenate %71, %74, %77, %80 in 1 : vector<32x8xf32>, vector<32x8xf32>, vector<32x8xf32>, vector<32x8xf32> -> vector<32x32xf32>
    %cst_31 = arith.constant dense<0.000000e+00> : vector<32x32xf32>
    %82 = tpu.matmul %81, %10, %cst_31 {dimension_numbers = #tpu.dot_dimension_numbers<[1], [0], [0], [1], [0, 0, 1, 1], [], []>} : vector<32x32xf32>, vector<32x32xf32>, vector<32x32xf32> -> vector<32x32xf32>
    %83 = arith.addf %0, %82 : vector<32x32xf32>
    %84 = vector.broadcast %3 : vector<1x32xf32> to vector<32x32xf32>
    %85 = arith.addf %83, %84 : vector<32x32xf32>
    %cst_32 = arith.constant dense<0.000000e+00> : vector<32xf32>
    %86 = vector.multi_reduction <add>, %85, %cst_32 [1] : vector<32x32xf32> to vector<32xf32>
    %87 = vector.shape_cast %86 : vector<32xf32> to vector<32x1xf32>
    %cst_33 = arith.constant 3.200000e+01 : f32
    %88 = vector.broadcast %cst_33 : f32 to vector<32x1xf32>
    %89 = arith.divf %87, %88 : vector<32x1xf32>
    %90 = vector.broadcast %89 : vector<32x1xf32> to vector<32x32xf32>
    %91 = arith.subf %85, %90 : vector<32x32xf32>
    %92 = arith.mulf %91, %91 : vector<32x32xf32>
    %cst_34 = arith.constant dense<0.000000e+00> : vector<32xf32>
    %93 = vector.multi_reduction <add>, %92, %cst_34 [1] : vector<32x32xf32> to vector<32xf32>
    %94 = vector.shape_cast %93 : vector<32xf32> to vector<32x1xf32>
    %cst_35 = arith.constant 3.200000e+01 : f32
    %95 = vector.broadcast %cst_35 : f32 to vector<32x1xf32>
    %96 = arith.divf %94, %95 : vector<32x1xf32>
    %97 = vector.broadcast %89 : vector<32x1xf32> to vector<32x32xf32>
    %98 = arith.subf %85, %97 : vector<32x32xf32>
    %cst_36 = arith.constant 9.99999974E-6 : f32
    %99 = vector.broadcast %cst_36 : f32 to vector<32x1xf32>
    %100 = arith.addf %96, %99 : vector<32x1xf32>
    %101 = math.rsqrt %100 : vector<32x1xf32>
    %102 = vector.broadcast %101 : vector<32x1xf32> to vector<32x32xf32>
    %103 = arith.mulf %98, %102 : vector<32x32xf32>
    %104 = vector.broadcast %4 : vector<1x32xf32> to vector<32x32xf32>
    %105 = arith.mulf %103, %104 : vector<32x32xf32>
    %106 = vector.broadcast %5 : vector<1x32xf32> to vector<32x32xf32>
    %107 = arith.addf %105, %106 : vector<32x32xf32>
    %cst_37 = arith.constant dense<0.000000e+00> : vector<32x64xf32>
    %108 = tpu.matmul %107, %11, %cst_37 {dimension_numbers = #tpu.dot_dimension_numbers<[1], [0], [0], [1], [0, 0, 1, 1], [], []>} : vector<32x32xf32>, vector<32x64xf32>, vector<32x64xf32> -> vector<32x64xf32>
    %109 = vector.broadcast %6 : vector<1x64xf32> to vector<32x64xf32>
    %110 = arith.addf %108, %109 : vector<32x64xf32>
    %cst_38 = arith.constant 5.000000e-01 : f32
    %111 = vector.broadcast %cst_38 : f32 to vector<32x64xf32>
    %112 = arith.mulf %111, %110 : vector<32x64xf32>
    %cst_39 = arith.constant 0.707106769 : f32
    %113 = vector.broadcast %cst_39 : f32 to vector<32x64xf32>
    %114 = arith.mulf %110, %113 : vector<32x64xf32>
    %115 = math.absf %114 : vector<32x64xf32>
    %cst_40 = arith.constant 0.327591091 : f32
    %116 = vector.broadcast %cst_40 : f32 to vector<32x64xf32>
    %117 = arith.mulf %116, %115 : vector<32x64xf32>
    %cst_41 = arith.constant 1.000000e+00 : f32
    %118 = vector.broadcast %cst_41 : f32 to vector<32x64xf32>
    %119 = arith.addf %118, %117 : vector<32x64xf32>
    %cst_42 = arith.constant 1.000000e+00 : f32
    %120 = vector.broadcast %cst_42 : f32 to vector<32x64xf32>
    %121 = arith.divf %120, %119 : vector<32x64xf32>
    %cst_43 = arith.constant 1.06140542 : f32
    %122 = vector.broadcast %cst_43 : f32 to vector<32x64xf32>
    %123 = arith.mulf %122, %121 : vector<32x64xf32>
    %cst_44 = arith.constant 1.45315206 : f32
    %124 = vector.broadcast %cst_44 : f32 to vector<32x64xf32>
    %125 = arith.subf %123, %124 : vector<32x64xf32>
    %126 = arith.mulf %125, %121 : vector<32x64xf32>
    %cst_45 = arith.constant 1.42141378 : f32
    %127 = vector.broadcast %cst_45 : f32 to vector<32x64xf32>
    %128 = arith.addf %126, %127 : vector<32x64xf32>
    %129 = arith.mulf %128, %121 : vector<32x64xf32>
    %cst_46 = arith.constant 0.284496725 : f32
    %130 = vector.broadcast %cst_46 : f32 to vector<32x64xf32>
    %131 = arith.subf %129, %130 : vector<32x64xf32>
    %132 = arith.mulf %131, %121 : vector<32x64xf32>
    %cst_47 = arith.constant 0.254829586 : f32
    %133 = vector.broadcast %cst_47 : f32 to vector<32x64xf32>
    %134 = arith.addf %132, %133 : vector<32x64xf32>
    %135 = arith.mulf %134, %121 : vector<32x64xf32>
    %cst_48 = arith.constant 0.000000e+00 : f32
    %136 = vector.broadcast %cst_48 : f32 to vector<32x64xf32>
    %137 = arith.subf %136, %115 : vector<32x64xf32>
    %138 = arith.mulf %137, %115 : vector<32x64xf32>
    %139 = math.exp %138 : vector<32x64xf32>
    %140 = arith.mulf %135, %139 : vector<32x64xf32>
    %cst_49 = arith.constant 1.000000e+00 : f32
    %141 = vector.broadcast %cst_49 : f32 to vector<32x64xf32>
    %142 = arith.subf %141, %140 : vector<32x64xf32>
    %cst_50 = arith.constant 0.000000e+00 : f32
    %143 = vector.broadcast %cst_50 : f32 to vector<32x64xf32>
    %144 = arith.cmpf oge, %114, %143 : vector<32x64xf32>
    %cst_51 = arith.constant 0.000000e+00 : f32
    %145 = vector.broadcast %cst_51 : f32 to vector<32x64xf32>
    %146 = arith.subf %145, %142 : vector<32x64xf32>
    %147 = arith.select %144, %142, %146 : vector<32x64xi1>, vector<32x64xf32>
    %cst_52 = arith.constant 1.000000e+00 : f32
    %148 = vector.broadcast %cst_52 : f32 to vector<32x64xf32>
    %149 = arith.addf %148, %147 : vector<32x64xf32>
    %150 = arith.mulf %112, %149 : vector<32x64xf32>
    %cst_53 = arith.constant dense<0.000000e+00> : vector<32x32xf32>
    %151 = tpu.matmul %150, %12, %cst_53 {dimension_numbers = #tpu.dot_dimension_numbers<[1], [0], [0], [1], [0, 0, 1, 1], [], []>} : vector<32x64xf32>, vector<64x32xf32>, vector<32x32xf32> -> vector<32x32xf32>
    %152 = vector.broadcast %7 : vector<1x32xf32> to vector<32x32xf32>
    %153 = arith.addf %151, %152 : vector<32x32xf32>
    %154 = arith.addf %85, %153 : vector<32x32xf32>
    %c0_54 = arith.constant 0 : index
    %c0_55 = arith.constant 0 : index
    %155 = vector.load %arg2[%c0_54, %c0_55] : memref<32x32xf32, #tpu.memory_space<vmem>>, vector<32x32xf32>
    tpu.vector_store %arg2[%c0_54, %c0_55], %154 {strides = array<i32>} : memref<32x32xf32, #tpu.memory_space<vmem>>, vector<32x32xf32>,
    return
  }
}

</mosaic_0001>

<bundles_post_ra>
// kernel: lora_transformer_block.1
= control target key start
LH: loop header
LB: loop body
LE: loop exit
PB: predicated region body
PF: predicated region fallthrough
CT: control target
= control target key end

     0   :  { %7 = vsyncpa [#allocation3], 0  ;;  %s3272_s0 = inlined_call_operand.hbm [shape: f32[32,32], index: 0, kind: input, shape index: {}]   ;;  %s3273_s1 = inlined_call_operand.hbm [shape: f32[240,128], index: 1, kind: input, shape index: {}]   ;;  %s3274_s2 = inlined_call_operand.hbm [shape: f32[32,32], index: 2, kind: output, shape index: {}]  }
   0x1   :  { %8 = vsyncpa [#allocation6], 0 }
   0x2   :  { %9 = vsyncpa [#allocation4], 0  ;;  %s2806_s9 = smov [#allocation2]   ;;  %s2734_s13 = scalar_lea.hbm %s3272_s0, 512 }
   0x3   :  { %s15_s10 = sshll.u32 %s2806_s9, 4  ;;  %p2735_p0 = scmp.ne.s32.totalorder %s3272_s0, %s2734_s13  ;;  %s16_s10 = int_to_ptr.vmem [resolvable:$true] %s15_s10 }
   0x4   :  { %p2738_p1 = scmp.lt.u32.totalorder %s2734_s13, %s3272_s0 }
   0x6   :  { %p2740_p2 = pnand %p2738_p1, %p2735_p0 }
   0x8   :  { %2743 = shalt.err (!%p2740_p2)
}
   0x9   :  { %s2744_s18 = scalar_lea.vmem %s16_s10, 512  ;;  %p2749_p4 = scmp.lt.s32.totalorder %s16_s10, %s16_s10 }
   0xa   :  { %p2745_p3 = scmp.ne.s32.totalorder %s16_s10, %s2744_s18  ;;  %p2750_p5 = scmp.lt.s32.totalorder %s2744_s18, %s2744_s18 }
   0xc   :  { %p2751_p6 = por %p2750_p5, %p2749_p4 }
   0xe   :  { %p2752_p7 = pnand %p2751_p6, %p2745_p3 }
  0x10   :  { %2755 = shalt.err (!%p2752_p7)
}
  0x11   :  { %s2807_s19 = smov 128   ;;  %s2808_s20 = smov 8  }
  0x12   :  { %21 = dma.hbm_to_vmem [thread:$0]  %s3272_s0, 512, %s16_s10, [#allocation3], %s2807_s19, %s2807_s19, %s2808_s20  }
  0x13   :  { %s2809_s23 = smov [#allocation5]   ;;  %s2756_s27 = scalar_lea.hbm %s3273_s1, 3840 }
  0x14   :  { %s27_s24 = sshll.u32 %s2809_s23, 4  ;;  %p2757_p8 = scmp.ne.s32.totalorder %s3273_s1, %s2756_s27  ;;  %s28_s24 = int_to_ptr.vmem [resolvable:$true] %s27_s24 }
  0x15   :  { %p2760_p9 = scmp.lt.u32.totalorder %s2756_s27, %s3273_s1 }
  0x17   :  { %p2762_p10 = pnand %p2760_p9, %p2757_p8 }
  0x19   :  { %2765 = shalt.err (!%p2762_p10)
}
  0x1a   :  { %s2766_s4 = scalar_lea.vmem %s28_s24, 3840  ;;  %p2771_p12 = scmp.lt.s32.totalorder %s28_s24, %s28_s24 }
  0x1b   :  { %p2767_p11 = scmp.ne.s32.totalorder %s28_s24, %s2766_s4  ;;  %p2772_p13 = scmp.lt.s32.totalorder %s2766_s4, %s2766_s4 }
  0x1d   :  { %p2773_p0 = por %p2772_p13, %p2771_p12 }
  0x1f   :  { %p2774_p1 = pnand %p2773_p0, %p2767_p11 }
  0x21   :  { %2777 = shalt.err (!%p2774_p1)
}
  0x22   :  { %33 = dma.hbm_to_vmem [thread:$0]  %s3273_s1, 3840, %s28_s24, [#allocation6], %s2807_s19, %s2807_s19, %s2808_s20  }
  0x23   :  { %2800 = dma.done.wait [#allocation3], 512  }
  0x24   :  { %2801 = vsyncadd [#allocation3], 4294966784 }
  0x25   :  { %2802 = dma.done.wait [#allocation6], 3840  }
  0x26   :  { %2803 = vsyncadd [#allocation6], 4294963456  ;;  %vm80_vm0 = vcmask 261120   ;;  %v40_v0 = vld [vmem:[#allocation2] sm:$0xff]  ;;  %v42_v1 = vld [vmem:[#allocation2 + $0x10] sm:$0xff]  ;;  %vm280_vm1 = vcmask 1043456  }
  0x27   :  { %v41_v2 = vld [vmem:[#allocation2 + $0x8] sm:$0xff]  ;;  %v81_v3 = vsel %vm80_vm0, %v40_v0, 0.0  ;;  %v87_v4 = vsel %vm80_vm0, %v42_v1, 0.0  ;;  %v43_v5 = vld [vmem:[#allocation2 + $0x18] sm:$0xff]  ;;  %v57_v29 = vld [vmem:[#allocation5 + $0x30] sm:$0xff]  ;;  %s2810_s1 = smov 32  }
  0x28   :  { %82 = vadd.xlane.f32.xlu0 %v81_v3  ;;  %88 = vadd.xlane.f32.xlu1 %v87_v4  ;;  %v84_v6 = vsel %vm80_vm0, %v41_v2, 0.0  ;;  %v90_v7 = vsel %vm80_vm0, %v43_v5, 0.0  ;;  %v56_v28 = vld [vmem:[#allocation5 + $0x28] sm:$0xff]  ;;  %v58_v30 = vld [vmem:[#allocation5 + $0x38] sm:$0xff]  ;;  %v59_v32 = vld [vmem:[#allocation5 + $0x40] sm:$0xff]  ;;  %vm267_vm2 = vcmask 293888  }
  0x29   :  { %v2407_v31 = vpack.c.bf16 %v57_v29, %v56_v28  ;;  %v2411_v33 = vpack.c.bf16 %v59_v32, %v58_v30  ;;  %v2022_v47 = vld [vmem:[#allocation5 + $0xe8] ss:$0 sm:$0xff]  ;;  %v2023_v49 = vld [vmem:[#allocation5 + $0xe9] ss:$0 sm:$0xff]  ;;  %v54_v4 = vld [vmem:[#allocation5 + $0x18] sm:$0xff]  ;;  %vm381_vm3 = vcmask 64512  }
  0x2a   :  { %s2811_s6 = smov 88   ;;  %s2812_s7 = smov 96   ;;  %vm2923_vm4 = vmpackc.low %vm381_vm3, %vm381_vm3  ;;  %vm1498_vm5 = vcmask 130048   ;;  %vm1503_vm6 = vcmask 195584   ;;  %vm1898_vm9 = vcmask 523264  }
  0x2b   :  { %2408 = vmatprep.subr.bf16.mxu1 %v2407_v31  ;;  %s2813_s8 = smov 72   ;;  %s2814_s9 = smov 80  }
  0x2c   :  { %85 = vadd.xlane.f32.xlu0 %v84_v6  ;;  %91 = vadd.xlane.f32.xlu1 %v90_v7  ;;  %v55_v6 = vld [vmem:[#allocation5 + $0x20] sm:$0xf]  ;;  %s2815_s10 = smov 120   ;;  %s2816_s11 = smov 112  }
  0x2d   :  { %2410 = vmatpush3.bf16.msra.mxu1 %v2407_v31  ;;  %s2817_s12 = smov 104   ;;  %s2818_s13 = smov 56  }
  0x2e   :  { %2412 = vmatprep.subr.bf16.mxu1 %v2411_v33  ;;  %s2819_s14 = smov 64   ;;  %s2820_s15 = smov 40  }
  0x2f   :  { %s2821_s16 = smov 48   ;;  %s2822_s17 = smov 16  }
  0x30   :  { %s2823_s18 = smov 24   ;;  %s2824_s21 = smov [#allocation7]  }
  0x31   :  { %2414 = vmatpush3.bf16.msra.mxu1 %v2411_v33  ;;  %s2009_s22 = sshll.u32 %s2824_s21, 4  ;;  %s2010_s22 = int_to_ptr.vmem [resolvable:$true] %s2009_s22 }
  0x32   :  { %s2778_s23 = scalar_lea.vmem %s2010_s22, 512  ;;  %p2783_p3 = scmp.lt.s32.totalorder %s2010_s22, %s2010_s22 }
  0x33   :  { %p2779_p2 = scmp.ne.s32.totalorder %s2010_s22, %s2778_s23  ;;  %p2784_p4 = scmp.lt.s32.totalorder %s2778_s23, %s2778_s23 }
  0x35   :  { %p2785_p5 = por %p2784_p4, %p2783_p3 }
  0x37   :  { %p2786_p6 = pnand %p2785_p5, %p2779_p2 }
  0xb5   :  { %v83_v8 = vpop.xlane.xlu0 %82  ;;  %v89_v9 = vpop.xlane.xlu1 %88 }
  0xb6   :  { %v94_v10 = vmul.f32 0.03125, %v83_v8  ;;  %v96_v11 = vmul.f32 0.03125, %v89_v9 }
  0xb8   :  { %v98_v12 = vsub.f32 %v40_v0, %v94_v10  ;;  %v100_v13 = vsub.f32 %v42_v1, %v96_v11  ;;  %v51_v0 = vld [vmem:[#allocation5] sm:$0xff]  ;;  %v52_v1 = vld [vmem:[#allocation5 + $0x8] sm:$0xff] }
  0xb9   :  { %v86_v14 = vpop.xlane.xlu0 %85  ;;  %v92_v15 = vpop.xlane.xlu1 %91  ;;  %v2415_v3 = vpack.c.bf16 %v52_v1, %v51_v0 }
  0xba   :  { %v95_v16 = vmul.f32 0.03125, %v86_v14  ;;  %v97_v17 = vmul.f32 0.03125, %v92_v15  ;;  %v102_v18 = vmul.f32 %v98_v12, %v98_v12  ;;  %v104_v19 = vmul.f32 %v100_v13, %v100_v13 }
  0xbb   :  { %2416 = vmatprep.subr.bf16.mxu1 %v2415_v3 }
  0xbc   :  { %v99_v20 = vsub.f32 %v41_v2, %v95_v16  ;;  %v101_v21 = vsub.f32 %v43_v5, %v97_v17  ;;  %v106_v22 = vsel %vm80_vm0, %v102_v18, 0.0  ;;  %v112_v23 = vsel %vm80_vm0, %v104_v19, 0.0  ;;  %v53_v2 = vld [vmem:[#allocation5 + $0x10] sm:$0xff] }
  0xbd   :  { %107 = vadd.xlane.f32.xlu0 %v106_v22  ;;  %v2419_v5 = vpack.c.bf16 %v54_v4, %v53_v2 }
  0xbe   :  { %v103_v24 = vmul.f32 %v99_v20, %v99_v20  ;;  %v105_v25 = vmul.f32 %v101_v21, %v101_v21 }
  0xc0   :  { %v109_v26 = vsel %vm80_vm0, %v103_v24, 0.0  ;;  %v115_v27 = vsel %vm80_vm0, %v105_v25, 0.0 }
  0xc1   :  { %113 = vadd.xlane.f32.xlu0 %v112_v23  ;;  %110 = vadd.xlane.f32.xlu1 %v109_v26 }
  0xc5   :  { %116 = vadd.xlane.f32.xlu1 %v115_v27 }
 0x14a   :  { %v108_v34 = vpop.xlane.xlu0 %107 }
 0x14b   :  { %v118_v35 = vmul.f32 0.03125, %v108_v34 }
 0x14d   :  { %v122_v36 = vadd.f32 1e-05, %v118_v35 }
 0x14e   :  { %v111_v37 = vpop.xlane.xlu1 %110  ;;  %v114_v38 = vpop.xlane.xlu0 %113 }
 0x14f   :  { %2634 = vrsqrt.f32 %v122_v36  ;;  %v119_v39 = vmul.f32 0.03125, %v111_v37  ;;  %v120_v40 = vmul.f32 0.03125, %v114_v38 }
 0x151   :  { %v123_v41 = vadd.f32 1e-05, %v119_v39  ;;  %v124_v42 = vadd.f32 1e-05, %v120_v40 }
 0x152   :  { %v117_v43 = vpop.xlane.xlu1 %116 }
 0x153   :  { %2636 = vrsqrt.f32 %v123_v41  ;;  %v121_v44 = vmul.f32 0.03125, %v117_v43 }
 0x154   :  { %2638 = vrsqrt.f32 %v124_v42 }
 0x155   :  { %v125_v45 = vadd.f32 1e-05, %v121_v44 }
 0x157   :  { %2640 = vrsqrt.f32 %v125_v45 }
 0x159   :  { %v2635_v46 = vpop.eup %2634 }
 0x15a   :  { %v130_v48 = vmul.f32 %v2635_v46, %v98_v12 }
 0x15c   :  { %v138_v50 = vmul.f32 %v2022_v47, %v130_v48 }
 0x15d   :  { %v2637_v51 = vpop.eup %2636 }
 0x15e   :  { %v2639_v52 = vpop.eup %2638  ;;  %v146_v53 = vadd.f32 %v2023_v49, %v138_v50  ;;  %v131_v54 = vmul.f32 %v2637_v51, %v99_v20 }
 0x15f   :  { %v132_v55 = vmul.f32 %v2639_v52, %v100_v13 }
 0x160   :  { %2223 = vmatprep.mubr.msk.f32.mxu1 %vm80_vm0, %v146_v53  ;;  %v139_v56 = vmul.f32 %v2022_v47, %v131_v54 }
 0x161   :  { %v2641_v57 = vpop.eup %2640  ;;  %v140_v58 = vmul.f32 %v2022_v47, %v132_v55 }
 0x162   :  { %v147_v59 = vadd.f32 %v2023_v49, %v139_v56  ;;  %v133_v60 = vmul.f32 %v2641_v57, %v101_v21 }
 0x163   :  { %v148_v61 = vadd.f32 %v2023_v49, %v140_v58 }
 0x164   :  { %2224 = vmatmul.mubr.msk.f32.vlgmr.msra.gmra.mrb[0].mxu1 %vm80_vm0, %v147_v59  ;;  %v141_v62 = vmul.f32 %v2022_v47, %v133_v60 }
 0x165   :  { %2226 = vmatprep.mubr.msk.f32.mxu1 %vm80_vm0, %v148_v61  ;;  %2418 = vmatpush3.bf16.msra.mxu1 %v2415_v3 }
 0x166   :  { %v149_v63 = vadd.f32 %v2023_v49, %v141_v62  ;;  %2420 = vmatprep.subr.bf16.mxu1 %v2419_v5 }
 0x168   :  { %2227 = vmatmul.mubr.msk.f32.gmra.mrb[2].mxu1 %vm80_vm0, %v149_v63 }
 0x169   :  { %2422 = vmatpush3.bf16.msra.mxu1 %v2419_v5 }
 0x16a   :  { %2237 = vmatprep.subr.msk.mxu1 %vm280_vm1, %v55_v6 }
 0x16d   :  { %2238 = vmatpush3.msk.msra.mxu1 %vm280_vm1, %v55_v6 }
 0x237   :  { %v2225_v7 = vpop.f32.mrb[0].mxu1 }
 0x238   :  { %253 = vrot.lane.b32.xlu1 %v2225_v7, %s2810_s1  ;;  %v228_v8 = vpop.f32.mrb[1].mxu1 }
 0x239   :  { %251 = vrot.lane.b32.xlu0 %v228_v8, %s2810_s1 }
 0x23b   :  { %v2228_v9 = vpop.f32.mrb[2].mxu1 }
 0x23c   :  { %v238_v10 = vpop.f32.mrb[3].mxu1 }
 0x23d   :  { %255 = vrot.lane.b32.xlu1 %v238_v10, %s2810_s1 }
 0x241   :  { %257 = vrot.lane.b32.xlu1 %v2228_v9, %s2810_s1 }
 0x2aa   :  { %v254_v11 = vpop.permute.xlu1 %253 }
 0x2ab   :  { %v252_v12 = vpop.permute.xlu0 %251  ;;  %v264_v14 = vsel %vm80_vm0, %v147_v59, %v254_v11 }
 0x2ac   :  { %v263_v13 = vsel %vm80_vm0, %v146_v53, %v252_v12 }
 0x2ad   :  { %2239 = vmatprep.mubr.msk.f32.mxu1 %vm267_vm2, %v263_v13 }
 0x2ae   :  { %2240 = vmatmul.mubr.msk.f32.vlgmr.msra.gmra.mrb[4].mxu1 %vm267_vm2, %v264_v14 }
 0x2af   :  { %v256_v15 = vpop.permute.xlu1 %255 }
 0x2b0   :  { %v265_v16 = vsel %vm80_vm0, %v148_v61, %v256_v15 }
 0x2b1   :  { %2242 = vmatprep.mubr.msk.f32.mxu1 %vm267_vm2, %v265_v16 }
 0x2b3   :  { %v258_v17 = vpop.permute.xlu1 %257 }
 0x2b4   :  { %v266_v18 = vsel %vm80_vm0, %v149_v63, %v258_v17 }
 0x2b5   :  { %2243 = vmatmul.mubr.msk.f32.gmra.mrb[6].mxu1 %vm267_vm2, %v266_v18 }
 0x381   :  { %v2886_v19 = vpop.f32.mrb[4].mxu1 }
 0x382   :  { %v350_v20 = vpop.f32.mrb[5].mxu1 }
 0x383   :  { %2253 = vmatprep.mubr.msk.f32.mxu0 %vm381_vm3, %v350_v20  ;;  %v2890_v21 = vpack.i.bf16 %v2886_v19, %v350_v20 }
 0x385   :  { %2560 = vrot.lane.b32.xlu1 %v2890_v21, %s2811_s6  ;;  %2555 = vrot.lane.b32.xlu0 %v2890_v21, %s2812_s7 }
 0x388   :  { %v2894_v22 = vpop.f32.mrb[6].mxu1 }
 0x389   :  { %v2896_v23 = vpop.f32.mrb[7].mxu1 }
 0x38a   :  { %v2900_v24 = vpack.i.bf16 %v2894_v22, %v2896_v23 }
 0x38c   :  { %2575 = vrot.lane.b32.xlu1 %v2900_v24, %s2811_s6  ;;  %2565 = vrot.lane.b32.xlu0 %v2900_v24, %s2812_s7 }
 0x390   :  { %2580 = vrot.lane.b32.xlu1 %v2890_v21, %s2813_s8  ;;  %2570 = vrot.lane.b32.xlu0 %v2890_v21, %s2814_s9 }
 0x394   :  { %485 = vrot.lane.b32.xlu1 %v2886_v19, %s2815_s10  ;;  %483 = vrot.lane.b32.xlu0 %v350_v20, %s2815_s10 }
 0x398   :  { %489 = vrot.lane.b32.xlu1 %v2894_v22, %s2815_s10  ;;  %600 = vrot.lane.b32.xlu0 %v350_v20, %s2816_s11 }
 0x39c   :  { %2590 = vrot.lane.b32.xlu1 %v2900_v24, %s2813_s8  ;;  %2585 = vrot.lane.b32.xlu0 %v2900_v24, %s2814_s9 }
 0x3a0   :  { %602 = vrot.lane.b32.xlu1 %v2886_v19, %s2816_s11  ;;  %717 = vrot.lane.b32.xlu0 %v350_v20, %s2817_s12 }
 0x3a4   :  { %719 = vrot.lane.b32.xlu1 %v2886_v19, %s2817_s12  ;;  %487 = vrot.lane.b32.xlu0 %v2896_v23, %s2815_s10 }
 0x3a8   :  { %606 = vrot.lane.b32.xlu1 %v2894_v22, %s2816_s11  ;;  %604 = vrot.lane.b32.xlu0 %v2896_v23, %s2816_s11 }
 0x3ac   :  { %723 = vrot.lane.b32.xlu1 %v2894_v22, %s2817_s12  ;;  %721 = vrot.lane.b32.xlu0 %v2896_v23, %s2817_s12 }
 0x3b0   :  { %2600 = vrot.lane.b32.xlu1 %v2890_v21, %s2818_s13  ;;  %2595 = vrot.lane.b32.xlu0 %v2890_v21, %s2819_s14 }
 0x3b4   :  { %2605 = vrot.lane.b32.xlu1 %v2900_v24, %s2819_s14 }
 0x3b8   :  { %2610 = vrot.lane.b32.xlu1 %v2900_v24, %s2818_s13 }
 0x3f7   :  { %v2561_v25 = vpop.permute.xlu1 %2560  ;;  %v2556_v26 = vpop.permute.xlu0 %2555 }
 0x3f8   :  { %v2563_v27 = vunpack.i.h.bf16 %v2561_v25  ;;  %v2562_v28 = vunpack.i.l.bf16 %v2561_v25  ;;  %v2558_v29 = vunpack.i.h.bf16 %v2556_v26  ;;  %v2557_v30 = vunpack.i.l.bf16 %v2556_v26 }
 0x3fa   :  { %v2435_v32 = vpack.c.bf16 %v2563_v27, %v2562_v28  ;;  %v2423_v33 = vpack.c.bf16 %v2558_v29, %v2557_v30  ;;  %v76_v27 = vld [vmem:[#allocation5 + $0xc8] sm:$0xff] }
 0x3fc   :  { %2425 = vmatprep.subr.msk.bf16.mxu0 %vm2923_vm4, %v2423_v33  ;;  %2437 = vmatprep.subr.msk.bf16.mxu1 %vm2923_vm4, %v2435_v32 }
 0x3fd   :  { %2428 = vmatpush3.bf16.xpose.msk.msra.mxu0 %vm2923_vm4, %v2423_v33  ;;  %2440 = vmatpush3.bf16.xpose.msk.msra.mxu1 %vm2923_vm4, %v2435_v32  ;;  %v79_v32 = vld [vmem:[#allocation5 + $0xe0] sm:$0xff] }
 0x3fe   :  { %v2576_v34 = vpop.permute.xlu1 %2575  ;;  %v2566_v35 = vpop.permute.xlu0 %2565 }
 0x3ff   :  { %v2578_v36 = vunpack.i.h.bf16 %v2576_v34  ;;  %v2577_v37 = vunpack.i.l.bf16 %v2576_v34  ;;  %v2568_v38 = vunpack.i.h.bf16 %v2566_v35  ;;  %v2567_v39 = vunpack.i.l.bf16 %v2566_v35 }
 0x401   :  { %v2441_v40 = vpack.c.bf16 %v2578_v36, %v2577_v37  ;;  %v2429_v41 = vpack.c.bf16 %v2568_v38, %v2567_v39 }
 0x402   :  { %v2581_v42 = vpop.permute.xlu1 %2580  ;;  %v2571_v43 = vpop.permute.xlu0 %2570 }
 0x403   :  { %v2583_v44 = vunpack.i.h.bf16 %v2581_v42  ;;  %v2582_v45 = vunpack.i.l.bf16 %v2581_v42  ;;  %v2573_v46 = vunpack.i.h.bf16 %v2571_v43  ;;  %v2572_v47 = vunpack.i.l.bf16 %v2571_v43  ;;  %2431 = vmatprep.subr.msk.bf16.mxu0 %vm2923_vm4, %v2429_v41  ;;  %2443 = vmatprep.subr.msk.bf16.mxu1 %vm2923_vm4, %v2441_v40  ;;  %v78_v42 = vld [vmem:[#allocation5 + $0xd8] sm:$0xff] }
 0x405   :  { %v2459_v48 = vpack.c.bf16 %v2583_v44, %v2582_v45  ;;  %v2447_v49 = vpack.c.bf16 %v2573_v46, %v2572_v47  ;;  %2434 = vmatpush3.bf16.xpose.msk.msra.mxu0 %vm2923_vm4, %v2429_v41  ;;  %2446 = vmatpush3.bf16.xpose.msk.msra.mxu1 %vm2923_vm4, %v2441_v40 }
 0x406   :  { %v486_v50 = vpop.permute.xlu1 %485  ;;  %v484_v51 = vpop.permute.xlu0 %483 }
 0x407   :  { %2267 = vmatprep.mubr.msk.f32.mxu1 %vm381_vm3, %v484_v51  ;;  %2449 = vmatprep.subr.msk.bf16.mxu0 %vm2923_vm4, %v2447_v49 }
 0x408   :  { %2461 = vmatprep.subr.msk.bf16.mxu1 %vm2923_vm4, %v2459_v48 }
 0x40a   :  { %v490_v52 = vpop.permute.xlu1 %489  ;;  %v601_v53 = vpop.permute.xlu0 %600 }
 0x40c   :  { %2254 = vmatmul.mubr.msk.f32.vlgmr.msra.gmra.mrb[0].mxu0 %vm381_vm3, %v2886_v19  ;;  %2268 = vmatmul.mubr.msk.f32.vlgmr.msra.gmra.mrb[8].mxu1 %vm381_vm3, %v486_v50 }
 0x40d   :  { %2256 = vmatprep.mubr.msk.f32.mxu0 %vm381_vm3, %v2896_v23  ;;  %2452 = vmatpush3.bf16.xpose.msk.msra.mxu0 %vm2923_vm4, %v2447_v49  ;;  %v77_v23 = vld [vmem:[#allocation5 + $0xd0] sm:$0xff] }
 0x40e   :  { %2464 = vmatpush3.bf16.xpose.msk.msra.mxu1 %vm2923_vm4, %v2459_v48  ;;  %v2591_v54 = vpop.permute.xlu1 %2590  ;;  %v2586_v55 = vpop.permute.xlu0 %2585 }
 0x40f   :  { %v2593_v56 = vunpack.i.h.bf16 %v2591_v54  ;;  %v2592_v57 = vunpack.i.l.bf16 %v2591_v54  ;;  %v2588_v58 = vunpack.i.h.bf16 %v2586_v55  ;;  %v2587_v59 = vunpack.i.l.bf16 %v2586_v55 }
 0x410   :  { %2257 = vmatmul.mubr.msk.f32.gmra.mrb[2].mxu0 %vm381_vm3, %v2894_v22 }
 0x411   :  { %v2465_v60 = vpack.c.bf16 %v2593_v56, %v2592_v57  ;;  %v2453_v61 = vpack.c.bf16 %v2588_v58, %v2587_v59  ;;  %2281 = vmatprep.mubr.msk.f32.mxu0 %vm381_vm3, %v601_v53 }
 0x412   :  { %v603_v62 = vpop.permute.xlu1 %602  ;;  %v718_v63 = vpop.permute.xlu0 %717 }
 0x413   :  { %2455 = vmatprep.subr.msk.bf16.mxu0 %vm2923_vm4, %v2453_v61  ;;  %2467 = vmatprep.subr.msk.bf16.mxu1 %vm2923_vm4, %v2465_v60 }
 0x415   :  { %2458 = vmatpush3.bf16.xpose.msk.msra.mxu0 %vm2923_vm4, %v2453_v61 }
 0x416   :  { %2470 = vmatpush3.bf16.xpose.msk.msra.mxu1 %vm2923_vm4, %v2465_v60  ;;  %v720_v0 = vpop.permute.xlu1 %719  ;;  %v488_v1 = vpop.permute.xlu0 %487 }
 0x417   :  { %2270 = vmatprep.mubr.msk.f32.mxu1 %vm381_vm3, %v488_v1 }
 0x418   :  { %2271 = vmatmul.mubr.msk.f32.gmra.mrb[10].mxu1 %vm381_vm3, %v490_v52 }
 0x419   :  { %2295 = vmatprep.mubr.msk.f32.mxu1 %vm381_vm3, %v718_v63 }
 0x41a   :  { %v607_v2 = vpop.permute.xlu1 %606  ;;  %v605_v3 = vpop.permute.xlu0 %604 }
 0x41c   :  { %2282 = vmatmul.mubr.msk.f32.vlgmr.msra.gmra.mrb[4].mxu0 %vm381_vm3, %v603_v62 }
 0x41d   :  { %2296 = vmatmul.mubr.msk.f32.vlgmr.msra.gmra.mrb[12].mxu1 %vm381_vm3, %v720_v0  ;;  %2284 = vmatprep.mubr.msk.f32.mxu0 %vm381_vm3, %v605_v3 }
 0x41e   :  { %v724_v4 = vpop.permute.xlu1 %723  ;;  %v722_v5 = vpop.permute.xlu0 %721 }
 0x41f   :  { %2298 = vmatprep.mubr.msk.f32.mxu1 %vm381_vm3, %v722_v5 }
 0x420   :  { %2285 = vmatmul.mubr.msk.f32.gmra.mrb[6].mxu0 %vm381_vm3, %v607_v2 }
 0x421   :  { %2299 = vmatmul.mubr.msk.f32.gmra.mrb[14].mxu1 %vm381_vm3, %v724_v4 }
 0x422   :  { %v2601_v6 = vpop.permute.xlu1 %2600  ;;  %v2596_v7 = vpop.permute.xlu0 %2595 }
 0x423   :  { %v2603_v8 = vunpack.i.h.bf16 %v2601_v6  ;;  %v2602_v9 = vunpack.i.l.bf16 %v2601_v6  ;;  %v2598_v10 = vunpack.i.h.bf16 %v2596_v7  ;;  %v2597_v11 = vunpack.i.l.bf16 %v2596_v7 }
 0x425   :  { %v2479_v12 = vpack.c.bf16 %v2603_v8, %v2602_v9  ;;  %v2471_v13 = vpack.c.bf16 %v2598_v10, %v2597_v11 }
 0x426   :  { %v2606_v14 = vpop.permute.xlu1 %2605 }
 0x427   :  { %v2608_v15 = vunpack.i.h.bf16 %v2606_v14  ;;  %v2607_v16 = vunpack.i.l.bf16 %v2606_v14  ;;  %2472 = vmatprep.subr.bf16.mxu0 %v2471_v13  ;;  %2480 = vmatprep.subr.bf16.mxu1 %v2479_v12 }
 0x428   :  { %2474 = vmatpush3.bf16.msra.mxu0 %v2471_v13  ;;  %2482 = vmatpush3.bf16.msra.mxu1 %v2479_v12 }
 0x429   :  { %v2475_v17 = vpack.c.bf16 %v2608_v15, %v2607_v16 }
 0x42a   :  { %v2611_v18 = vpop.permute.xlu1 %2610 }
 0x42b   :  { %v2613_v19 = vunpack.i.h.bf16 %v2611_v18  ;;  %v2612_v20 = vunpack.i.l.bf16 %v2611_v18  ;;  %2476 = vmatprep.subr.bf16.mxu0 %v2475_v17 }
 0x42c   :  { %2478 = vmatpush3.bf16.msra.mxu0 %v2475_v17 }
 0x42d   :  { %v2483_v22 = vpack.c.bf16 %v2613_v19, %v2612_v20 }
 0x42f   :  { %2484 = vmatprep.subr.bf16.mxu1 %v2483_v22 }
 0x430   :  { %2486 = vmatpush3.bf16.msra.mxu1 %v2483_v22 }
 0x4df   :  { %v2255_v25 = vpop.f32.mrb[0].mxu0  ;;  %v2269_v26 = vpop.f32.mrb[8].mxu1 }
 0x4e0   :  { %v2977_v28 = vadd.f32 %v2255_v25, %v77_v23  ;;  %v2979_v29 = vadd.f32 %v2269_v26, %v77_v23  ;;  %v464_v30 = vpop.f32.mrb[1].mxu0  ;;  %v581_v31 = vpop.f32.mrb[9].mxu1 }
 0x4e1   :  { %v2981_v33 = vadd.f32 %v464_v30, %v76_v27  ;;  %v2989_v39 = vadd.f32 %v581_v31, %v76_v27 }
 0x4e2   :  { %v849_v34 = vsel %vm80_vm0, %v2979_v29, -inf  ;;  %v837_v35 = vsel %vm80_vm0, %v2977_v28, -inf }
 0x4e3   :  { %850 = vmax.xlane.f32.xlu0 %v849_v34  ;;  %838 = vmax.xlane.f32.xlu1 %v837_v35  ;;  %v2258_v36 = vpop.f32.mrb[2].mxu0  ;;  %v834_v41 = vsel %vm80_vm0, %v2981_v33, -inf  ;;  %v846_v44 = vsel %vm80_vm0, %v2989_v39, -inf }
 0x4e4   :  { %v2987_v37 = vadd.f32 %v2258_v36, %v79_v32  ;;  %v474_v38 = vpop.f32.mrb[3].mxu0 }
 0x4e5   :  { %v2995_v43 = vadd.f32 %v474_v38, %v78_v42 }
 0x4e6   :  { %v843_v40 = vsel %vm80_vm0, %v2987_v37, -inf }
 0x4e7   :  { %844 = vmax.xlane.f32.xlu1 %v843_v40  ;;  %835 = vmax.xlane.f32.xlu0 %v834_v41  ;;  %v840_v50 = vsel %vm80_vm0, %v2995_v43, -inf }
 0x4eb   :  { %v2272_v45 = vpop.f32.mrb[10].mxu1  ;;  %847 = vmax.xlane.f32.xlu0 %v846_v44 }
 0x4ec   :  { %v2999_v46 = vadd.f32 %v2272_v45, %v79_v32  ;;  %v591_v47 = vpop.f32.mrb[11].mxu1 }
 0x4ed   :  { %v3001_v48 = vadd.f32 %v591_v47, %v78_v42 }
 0x4ee   :  { %v855_v49 = vsel %vm80_vm0, %v2999_v46, -inf }
 0x4ef   :  { %856 = vmax.xlane.f32.xlu1 %v855_v49  ;;  %v2283_v51 = vpop.f32.mrb[4].mxu0  ;;  %841 = vmax.xlane.f32.xlu0 %v840_v50  ;;  %v852_v59 = vsel %vm80_vm0, %v3001_v48, -inf }
 0x4f0   :  { %v2297_v52 = vpop.f32.mrb[12].mxu1  ;;  %v3007_v53 = vadd.f32 %v2283_v51, %v77_v23  ;;  %v698_v54 = vpop.f32.mrb[5].mxu0 }
 0x4f1   :  { %v815_v55 = vpop.f32.mrb[13].mxu1  ;;  %v3009_v56 = vadd.f32 %v2297_v52, %v77_v23  ;;  %v3011_v57 = vadd.f32 %v698_v54, %v76_v27 }
 0x4f2   :  { %v861_v58 = vsel %vm80_vm0, %v3007_v53, -inf  ;;  %v3017_v0 = vadd.f32 %v815_v55, %v76_v27 }
 0x4f3   :  { %862 = vmax.xlane.f32.xlu1 %v861_v58  ;;  %v2286_v60 = vpop.f32.mrb[6].mxu0  ;;  %853 = vmax.xlane.f32.xlu0 %v852_v59  ;;  %v873_v2 = vsel %vm80_vm0, %v3009_v56, -inf  ;;  %v858_v3 = vsel %vm80_vm0, %v3011_v57, -inf }
 0x4f4   :  { %v2300_v61 = vpop.f32.mrb[14].mxu1  ;;  %v708_v62 = vpop.f32.mrb[7].mxu0  ;;  %v3019_v1 = vadd.f32 %v2286_v60, %v79_v32  ;;  %v870_v7 = vsel %vm80_vm0, %v3017_v0, -inf }
 0x4f5   :  { %v825_v63 = vpop.f32.mrb[15].mxu1  ;;  %v3025_v4 = vadd.f32 %v2300_v61, %v79_v32  ;;  %v3027_v5 = vadd.f32 %v708_v62, %v78_v42 }
 0x4f6   :  { %v867_v6 = vsel %vm80_vm0, %v3019_v1, -inf  ;;  %v3033_v8 = vadd.f32 %v825_v63, %v78_v42 }
 0x4f7   :  { %874 = vmax.xlane.f32.xlu1 %v873_v2  ;;  %859 = vmax.xlane.f32.xlu0 %v858_v3  ;;  %v879_v9 = vsel %vm80_vm0, %v3025_v4, -inf  ;;  %v864_v10 = vsel %vm80_vm0, %v3027_v5, -inf }
 0x4f8   :  { %v876_v11 = vsel %vm80_vm0, %v3033_v8, -inf }
 0x4fb   :  { %868 = vmax.xlane.f32.xlu1 %v867_v6  ;;  %871 = vmax.xlane.f32.xlu0 %v870_v7 }
 0x4ff   :  { %880 = vmax.xlane.f32.xlu1 %v879_v9  ;;  %865 = vmax.xlane.f32.xlu0 %v864_v10 }
 0x503   :  { %877 = vmax.xlane.f32.xlu0 %v876_v11 }
 0x510   :  { %2620 = vrot.lane.b32.xlu1 %v2890_v21, %s2820_s15 }
 0x519   :  { %2615 = vrot.lane.b32.xlu0 %v2890_v21, %s2821_s16 }
 0x570   :  { %v851_v12 = vpop.xlane.xlu0 %850  ;;  %v839_v13 = vpop.xlane.xlu1 %838 }
 0x571   :  { %v887_v14 = vsub.f32 %v2979_v29, %v851_v12  ;;  %v883_v15 = vsub.f32 %v2977_v28, %v839_v13 }
 0x573   :  { %v908_v16 = vmul.f32 1.442695, %v887_v14  ;;  %v900_v17 = vmul.f32 1.442695, %v883_v15 }
 0x574   :  { %v845_v18 = vpop.xlane.xlu1 %844  ;;  %v836_v19 = vpop.xlane.xlu0 %835 }
 0x575   :  { %v885_v20 = vsub.f32 %v2987_v37, %v845_v18  ;;  %v882_v22 = vsub.f32 %v2981_v33, %v836_v19  ;;  %2642 = vpow2.f32 %v900_v17 }
 0x576   :  { %2644 = vpow2.f32 %v908_v16 }
 0x577   :  { %v898_v23 = vmul.f32 1.442695, %v882_v22  ;;  %v904_v25 = vmul.f32 1.442695, %v885_v20 }
 0x578   :  { %v848_v26 = vpop.xlane.xlu0 %847 }
 0x579   :  { %v886_v21 = vsub.f32 %v2989_v39, %v848_v26  ;;  %2646 = vpow2.f32 %v898_v23 }
 0x57a   :  { %2648 = vpow2.f32 %v904_v25 }
 0x57b   :  { %v906_v27 = vmul.f32 1.442695, %v886_v21 }
 0x57c   :  { %v857_v29 = vpop.xlane.xlu1 %856  ;;  %v842_v28 = vpop.xlane.xlu0 %841 }
 0x57d   :  { %2650 = vpow2.f32 %v906_v27  ;;  %v889_v30 = vsub.f32 %v2999_v46, %v857_v29  ;;  %v884_v31 = vsub.f32 %v2995_v43, %v842_v28 }
 0x57f   :  { %v912_v32 = vmul.f32 1.442695, %v889_v30  ;;  %v902_v34 = vmul.f32 1.442695, %v884_v31  ;;  %v3052_v33 = vpop.eup %2642 }
 0x580   :  { %v863_v35 = vpop.xlane.xlu1 %862  ;;  %v854_v36 = vpop.xlane.xlu0 %853  ;;  %v933_v40 = vsel %vm80_vm0, %v3052_v33, 0.0 }
 0x581   :  { %v3054_v37 = vpop.eup %2644  ;;  %2652 = vpow2.f32 %v912_v32  ;;  %v891_v38 = vsub.f32 %v3007_v53, %v863_v35  ;;  %v888_v39 = vsub.f32 %v3001_v48, %v854_v36  ;;  %934 = vadd.xlane.f32.xlu1 %v933_v40 }
 0x582   :  { %2654 = vpow2.f32 %v902_v34  ;;  %v945_v46 = vsel %vm80_vm0, %v3054_v37, 0.0 }
 0x583   :  { %v916_v41 = vmul.f32 1.442695, %v891_v38  ;;  %v910_v42 = vmul.f32 1.442695, %v888_v39  ;;  %v3060_v43 = vpop.eup %2646 }
 0x584   :  { %v875_v44 = vpop.xlane.xlu1 %874  ;;  %v860_v45 = vpop.xlane.xlu0 %859  ;;  %v930_v48 = vsel %vm80_vm0, %v3060_v43, 0.0 }
 0x585   :  { %2656 = vpow2.f32 %v916_v41  ;;  %v895_v47 = vsub.f32 %v3009_v56, %v875_v44  ;;  %v890_v49 = vsub.f32 %v3011_v57, %v860_v45  ;;  %v3068_v50 = vpop.eup %2648  ;;  %946 = vadd.xlane.f32.xlu1 %v945_v46  ;;  %931 = vadd.xlane.f32.xlu0 %v930_v48 }
 0x586   :  { %2658 = vpow2.f32 %v910_v42  ;;  %v939_v59 = vsel %vm80_vm0, %v3068_v50, 0.0 }
 0x587   :  { %v3070_v51 = vpop.eup %2650  ;;  %v924_v52 = vmul.f32 1.442695, %v895_v47  ;;  %v914_v53 = vmul.f32 1.442695, %v890_v49 }
 0x588   :  { %v869_v54 = vpop.xlane.xlu1 %868  ;;  %v872_v55 = vpop.xlane.xlu0 %871  ;;  %v942_v58 = vsel %vm80_vm0, %v3070_v51, 0.0 }
 0x589   :  { %2660 = vpow2.f32 %v924_v52  ;;  %v893_v56 = vsub.f32 %v3019_v1, %v869_v54  ;;  %v894_v57 = vsub.f32 %v3017_v0, %v872_v55  ;;  %940 = vadd.xlane.f32.xlu1 %v939_v59  ;;  %943 = vadd.xlane.f32.xlu0 %v942_v58 }
 0x58a   :  { %2662 = vpow2.f32 %v914_v53 }
 0x58b   :  { %v3078_v60 = vpop.eup %2652  ;;  %v920_v61 = vmul.f32 1.442695, %v893_v56  ;;  %v922_v62 = vmul.f32 1.442695, %v894_v57 }
 0x58c   :  { %v3080_v63 = vpop.eup %2654  ;;  %v881_v2 = vpop.xlane.xlu1 %880  ;;  %v951_v6 = vsel %vm80_vm0, %v3078_v60, 0.0 }
 0x58d   :  { %v866_v3 = vpop.xlane.xlu0 %865  ;;  %2664 = vpow2.f32 %v920_v61  ;;  %v897_v0 = vsub.f32 %v3025_v4, %v881_v2  ;;  %v936_v7 = vsel %vm80_vm0, %v3080_v63, 0.0  ;;  %952 = vadd.xlane.f32.xlu1 %v951_v6 }
 0x58e   :  { %v892_v1 = vsub.f32 %v3027_v5, %v866_v3  ;;  %2666 = vpow2.f32 %v922_v62  ;;  %937 = vadd.xlane.f32.xlu0 %v936_v7 }
 0x58f   :  { %v3088_v9 = vpop.eup %2656  ;;  %v928_v10 = vmul.f32 1.442695, %v897_v0 }
 0x590   :  { %v918_v11 = vmul.f32 1.442695, %v892_v1  ;;  %v3090_v12 = vpop.eup %2658  ;;  %v2621_v13 = vpop.permute.xlu1 %2620  ;;  %v957_v15 = vsel %vm80_vm0, %v3088_v9, 0.0 }
 0x591   :  { %v878_v14 = vpop.xlane.xlu0 %877  ;;  %2668 = vpow2.f32 %v928_v10  ;;  %v2623_v4 = vunpack.i.h.bf16 %v2621_v13  ;;  %v2622_v5 = vunpack.i.l.bf16 %v2621_v13  ;;  %958 = vadd.xlane.f32.xlu1 %v957_v15  ;;  %v948_v17 = vsel %vm80_vm0, %v3090_v12, 0.0 }
 0x592   :  { %v896_v16 = vsub.f32 %v3033_v8, %v878_v14  ;;  %2670 = vpow2.f32 %v918_v11  ;;  %949 = vadd.xlane.f32.xlu0 %v948_v17 }
 0x593   :  { %v3097_v18 = vpop.eup %2660  ;;  %v3099_v19 = vpack.c.bf16 %v2623_v4, %v2622_v5 }
 0x594   :  { %v926_v20 = vmul.f32 1.442695, %v896_v16  ;;  %v3101_v22 = vpop.eup %2662  ;;  %v969_v25 = vsel %vm80_vm0, %v3097_v18, 0.0 }
 0x595   :  { %v2616_v23 = vpop.permute.xlu0 %2615  ;;  %2496 = vmatprep.subr.bf16.mxu1 %v3099_v19  ;;  %v954_v21 = vsel %vm80_vm0, %v3101_v22, 0.0  ;;  %970 = vadd.xlane.f32.xlu1 %v969_v25 }
 0x596   :  { %2672 = vpow2.f32 %v926_v20  ;;  %v2618_v26 = vunpack.i.h.bf16 %v2616_v23  ;;  %v2617_v8 = vunpack.i.l.bf16 %v2616_v23  ;;  %955 = vadd.xlane.f32.xlu0 %v954_v21 }
 0x597   :  { %v3108_v27 = vpop.eup %2664 }
 0x598   :  { %v2487_v29 = vpack.c.bf16 %v2618_v26, %v2617_v8  ;;  %v3110_v28 = vpop.eup %2666  ;;  %v963_v30 = vsel %vm80_vm0, %v3108_v27, 0.0 }
 0x599   :  { %v966_v31 = vsel %vm80_vm0, %v3110_v28, 0.0  ;;  %964 = vadd.xlane.f32.xlu1 %v963_v30 }
 0x59a   :  { %2488 = vmatprep.subr.bf16.mxu0 %v2487_v29  ;;  %967 = vadd.xlane.f32.xlu0 %v966_v31 }
 0x59b   :  { %v3116_v32 = vpop.eup %2668 }
 0x59c   :  { %v3118_v34 = vpop.eup %2670  ;;  %v975_v35 = vsel %vm80_vm0, %v3116_v32, 0.0 }
 0x59d   :  { %v960_v36 = vsel %vm80_vm0, %v3118_v34, 0.0  ;;  %976 = vadd.xlane.f32.xlu1 %v975_v35 }
 0x59e   :  { %961 = vadd.xlane.f32.xlu0 %v960_v36  ;;  %v60_v36 = vld [vmem:[#allocation5 + $0x48] sm:$0xff] }
 0x5a0   :  { %v3124_v38 = vpop.eup %2672 }
 0x5a1   :  { %v972_v39 = vsel %vm80_vm0, %v3124_v38, 0.0 }
 0x5a2   :  { %973 = vadd.xlane.f32.xlu0 %v972_v39 }
 0x5ae   :  { %2630 = vrot.lane.b32.xlu1 %v2900_v24, %s2820_s15 }
 0x5b8   :  { %2625 = vrot.lane.b32.xlu0 %v2900_v24, %s2821_s16 }
 0x60e   :  { %v935_v40 = vpop.xlane.xlu1 %934 }
 0x60f   :  { %2674 = vrcp.f32 %v935_v40 }
 0x612   :  { %v947_v41 = vpop.xlane.xlu1 %946  ;;  %v932_v42 = vpop.xlane.xlu0 %931 }
 0x613   :  { %2676 = vrcp.f32 %v932_v42 }
 0x614   :  { %2678 = vrcp.f32 %v947_v41 }
 0x616   :  { %v941_v44 = vpop.xlane.xlu1 %940  ;;  %v944_v45 = vpop.xlane.xlu0 %943 }
 0x617   :  { %2680 = vrcp.f32 %v944_v45  ;;  %v63_v45 = vld [vmem:[#allocation5 + $0x60] sm:$0xff] }
 0x618   :  { %2682 = vrcp.f32 %v941_v44  ;;  %v62_v44 = vld [vmem:[#allocation5 + $0x58] sm:$0xff] }
 0x619   :  { %v2675_v49 = vpop.eup %2674 }
 0x61a   :  { %v953_v46 = vpop.xlane.xlu1 %952  ;;  %v995_v54 = vmul.f32 %v2675_v49, %v3052_v33 }
 0x61b   :  { %v938_v47 = vpop.xlane.xlu0 %937 }
 0x61c   :  { %2684 = vrcp.f32 %v938_v47 }
 0x61d   :  { %v2677_v48 = vpop.eup %2676  ;;  %2686 = vrcp.f32 %v953_v46  ;;  %v2507_v46 = vpack.c.bf16 %v63_v45, %v62_v44 }
 0x61e   :  { %v959_v52 = vpop.xlane.xlu1 %958  ;;  %v994_v24 = vmul.f32 %v2677_v48, %v3060_v43  ;;  %v2679_v55 = vpop.eup %2678 }
 0x61f   :  { %v950_v53 = vpop.xlane.xlu0 %949  ;;  %v999_v61 = vmul.f32 %v2679_v55, %v3054_v37 }
 0x620   :  { %2688 = vrcp.f32 %v950_v53  ;;  %2309 = vmatprep.mubr.msk.f32.mxu0 %vm80_vm0, %v994_v24 }
 0x621   :  { %v2681_v58 = vpop.eup %2680  ;;  %2310 = vmatmul.mubr.msk.f32.vlgmr.msra.gmra.mrb[8].mxu0 %vm80_vm0, %v995_v54 }
 0x622   :  { %v971_v56 = vpop.xlane.xlu1 %970  ;;  %2490 = vmatpush3.bf16.msra.mxu0 %v2487_v29  ;;  %v998_v59 = vmul.f32 %v2681_v58, %v3070_v51  ;;  %v2683_v62 = vpop.eup %2682 }
 0x623   :  { %v956_v57 = vpop.xlane.xlu0 %955  ;;  %v997_v6 = vmul.f32 %v2683_v62, %v3068_v50 }
 0x624   :  { %2690 = vrcp.f32 %v956_v57  ;;  %2323 = vmatprep.mubr.msk.f32.mxu1 %vm80_vm0, %v998_v59 }
 0x625   :  { %2324 = vmatmul.mubr.msk.f32.vlgmr.msra.gmra.mrb[16].mxu1 %vm80_vm0, %v999_v61  ;;  %2692 = vrcp.f32 %v971_v56 }
 0x626   :  { %v2685_v43 = vpop.eup %2684  ;;  %v965_v33 = vpop.xlane.xlu1 %964  ;;  %2498 = vmatpush3.bf16.msra.mxu1 %v3099_v19 }
 0x627   :  { %v968_v2 = vpop.xlane.xlu0 %967  ;;  %v996_v3 = vmul.f32 %v2685_v43, %v3080_v63  ;;  %v2687_v51 = vpop.eup %2686 }
 0x628   :  { %2694 = vrcp.f32 %v968_v2  ;;  %v1001_v10 = vmul.f32 %v2687_v51, %v3078_v60 }
 0x629   :  { %2312 = vmatprep.mubr.msk.f32.mxu0 %vm80_vm0, %v996_v3  ;;  %2696 = vrcp.f32 %v959_v52 }
 0x62a   :  { %v2689_v37 = vpop.eup %2688  ;;  %2313 = vmatmul.mubr.msk.f32.gmra.mrb[10].mxu0 %vm80_vm0, %v997_v6  ;;  %v977_v0 = vpop.xlane.xlu1 %976 }
 0x62b   :  { %v962_v1 = vpop.xlane.xlu0 %961  ;;  %v1000_v7 = vmul.f32 %v2689_v37, %v3090_v12 }
 0x62c   :  { %2698 = vrcp.f32 %v962_v1 }
 0x62d   :  { %2326 = vmatprep.mubr.msk.f32.mxu1 %vm80_vm0, %v1000_v7  ;;  %2700 = vrcp.f32 %v977_v0 }
 0x62e   :  { %v2691_v11 = vpop.eup %2690  ;;  %2327 = vmatmul.mubr.msk.f32.gmra.mrb[18].mxu1 %vm80_vm0, %v1001_v10  ;;  %v2631_v50 = vpop.permute.xlu1 %2630 }
 0x62f   :  { %v2633_v63 = vunpack.i.h.bf16 %v2631_v50  ;;  %v2632_v13 = vunpack.i.l.bf16 %v2631_v50  ;;  %v974_v14 = vpop.xlane.xlu0 %973  ;;  %v1002_v15 = vmul.f32 %v2691_v11, %v3101_v22  ;;  %v2693_v4 = vpop.eup %2692 }
 0x630   :  { %2702 = vrcp.f32 %v974_v14  ;;  %v1007_v20 = vmul.f32 %v2693_v4, %v3097_v18 }
 0x631   :  { %2704 = vrcp.f32 %v965_v33  ;;  %v2499_v12 = vpack.c.bf16 %v2633_v63, %v2632_v13  ;;  %2337 = vmatprep.mubr.msk.f32.mxu0 %vm80_vm0, %v1002_v15 }
 0x632   :  { %v2695_v60 = vpop.eup %2694 }
 0x633   :  { %v2626_v5 = vpop.permute.xlu0 %2625  ;;  %2500 = vmatprep.subr.bf16.mxu1 %v2499_v12  ;;  %v1006_v16 = vmul.f32 %v2695_v60, %v3110_v28  ;;  %v2697_v22 = vpop.eup %2696 }
 0x634   :  { %v2628_v17 = vunpack.i.h.bf16 %v2626_v5  ;;  %v2627_v19 = vunpack.i.l.bf16 %v2626_v5  ;;  %2502 = vmatpush3.bf16.msra.mxu1 %v2499_v12  ;;  %v1003_v21 = vmul.f32 %v2697_v22, %v3088_v9  ;;  %v2085_v12 = vld [vmem:[#allocation5 + $0xea] ss:$0 sm:$0xff] }
 0x635   :  { %2351 = vmatprep.mubr.msk.f32.mxu1 %vm80_vm0, %v1006_v16  ;;  %v2730_v5 = vld [vmem:[#allocation2 + $0x8] sm:$0xff] }
 0x636   :  { %v2491_v23 = vpack.c.bf16 %v2628_v17, %v2627_v19  ;;  %v2699_v25 = vpop.eup %2698  ;;  %v2731_v19 = vld [vmem:[#allocation2] sm:$0xff] }
 0x637   :  { %2352 = vmatmul.mubr.msk.f32.vlgmr.msra.gmra.mrb[20].mxu1 %vm80_vm0, %v1007_v20  ;;  %v2701_v26 = vpop.eup %2700  ;;  %v1004_v28 = vmul.f32 %v2699_v25, %v3118_v34  ;;  %v61_v34 = vld [vmem:[#allocation5 + $0x50] sm:$0xff] }
 0x638   :  { %2492 = vmatprep.subr.bf16.mxu0 %v2491_v23  ;;  %v1009_v18 = vmul.f32 %v2701_v26, %v3116_v32  ;;  %v2503_v39 = vpack.c.bf16 %v61_v34, %v60_v36 }
 0x639   :  { %2494 = vmatpush3.bf16.msra.mxu0 %v2491_v23 }
 0x63a   :  { %v2703_v8 = vpop.eup %2702  ;;  %2504 = vmatprep.subr.bf16.mxu0 %v2503_v39 }
 0x63b   :  { %v2705_v29 = vpop.eup %2704  ;;  %v1008_v30 = vmul.f32 %v2703_v8, %v3124_v38 }
 0x63c   :  { %2338 = vmatmul.mubr.msk.f32.vlgmr.msra.gmra.mrb[12].mxu0 %vm80_vm0, %v1003_v21  ;;  %v1005_v31 = vmul.f32 %v2705_v29, %v3108_v27  ;;  %v2732_v29 = vld [vmem:[#allocation2 + $0x18] sm:$0xff] }
 0x63d   :  { %2340 = vmatprep.mubr.msk.f32.mxu0 %vm80_vm0, %v1004_v28  ;;  %2354 = vmatprep.mubr.msk.f32.mxu1 %vm80_vm0, %v1008_v30  ;;  %v2733_v30 = vld [vmem:[#allocation2 + $0x10] sm:$0xff] }
 0x63e   :  { %2355 = vmatmul.mubr.msk.f32.gmra.mrb[22].mxu1 %vm80_vm0, %v1009_v18  ;;  %2506 = vmatpush3.bf16.msra.mxu0 %v2503_v39 }
 0x63f   :  { %2508 = vmatprep.subr.bf16.mxu0 %v2507_v46 }
 0x640   :  { %2341 = vmatmul.mubr.msk.f32.gmra.mrb[14].mxu0 %vm80_vm0, %v1005_v31 }
 0x642   :  { %2510 = vmatpush3.bf16.msra.mxu0 %v2507_v46 }
 0x6f4   :  { %v2311_v9 = vpop.f32.mrb[8].mxu0 }
 0x6f5   :  { %v1100_v35 = vpop.f32.mrb[9].mxu0 }
 0x6f8   :  { %v2325_v38 = vpop.f32.mrb[16].mxu1 }
 0x6f9   :  { %1452 = vrot.lane.b32.xlu1 %v2325_v38, %s2808_s20  ;;  %v1209_v32 = vpop.f32.mrb[17].mxu1 }
 0x6fa   :  { %1450 = vrot.lane.b32.xlu0 %v1209_v32, %s2808_s20 }
 0x6fd   :  { %v2314_v40 = vpop.f32.mrb[10].mxu0 }
 0x6fe   :  { %v1110_v41 = vpop.f32.mrb[11].mxu0 }
 0x701   :  { %v2328_v42 = vpop.f32.mrb[18].mxu1 }
 0x702   :  { %1456 = vrot.lane.b32.xlu1 %v2328_v42, %s2808_s20  ;;  %v1219_v27 = vpop.f32.mrb[19].mxu1 }
 0x703   :  { %1454 = vrot.lane.b32.xlu0 %v1219_v27, %s2808_s20 }
 0x70a   :  { %v2353_v47 = vpop.f32.mrb[20].mxu1 }
 0x70b   :  { %v1427_v49 = vpop.f32.mrb[21].mxu1 }
 0x70f   :  { %v2339_v48 = vpop.f32.mrb[12].mxu0 }
 0x710   :  { %1468 = vrot.lane.b32.xlu1 %v2339_v48, %s2822_s17  ;;  %v1318_v52 = vpop.f32.mrb[13].mxu0 }
 0x711   :  { %v2356_v53 = vpop.f32.mrb[22].mxu1  ;;  %1466 = vrot.lane.b32.xlu0 %v1318_v52, %s2822_s17 }
 0x712   :  { %v1437_v24 = vpop.f32.mrb[23].mxu1 }
 0x713   :  { %v2342_v54 = vpop.f32.mrb[14].mxu0 }
 0x714   :  { %1484 = vrot.lane.b32.xlu1 %v2353_v47, %s2823_s18  ;;  %v1328_v55 = vpop.f32.mrb[15].mxu0 }
 0x715   :  { %1482 = vrot.lane.b32.xlu0 %v1427_v49, %s2823_s18 }
 0x718   :  { %1472 = vrot.lane.b32.xlu1 %v2342_v54, %s2822_s17 }
 0x719   :  { %1470 = vrot.lane.b32.xlu0 %v1328_v55, %s2822_s17 }
 0x71c   :  { %1488 = vrot.lane.b32.xlu1 %v2356_v53, %s2823_s18 }
 0x71d   :  { %1486 = vrot.lane.b32.xlu0 %v1437_v24, %s2823_s18 }
 0x76b   :  { %v1453_v58 = vpop.permute.xlu1 %1452 }
 0x76c   :  { %v1451_v56 = vpop.permute.xlu0 %1450  ;;  %v1495_v2 = vsel %vm381_vm3, %v2311_v9, %v1453_v58 }
 0x76d   :  { %v1494_v43 = vsel %vm381_vm3, %v1100_v35, %v1451_v56  ;;  %v64_v56 = vld [vmem:[#allocation5 + $0x68] sm:$0xff] }
 0x774   :  { %v1457_v57 = vpop.permute.xlu1 %1456 }
 0x775   :  { %v1455_v59 = vpop.permute.xlu0 %1454  ;;  %v1497_v50 = vsel %vm381_vm3, %v2314_v40, %v1457_v57  ;;  %v65_v57 = vld [vmem:[#allocation5 + $0x70] sm:$0xff] }
 0x776   :  { %v1496_v10 = vsel %vm381_vm3, %v1110_v41, %v1455_v59  ;;  %v2511_v59 = vpack.c.bf16 %v65_v57, %v64_v56 }
 0x778   :  { %2512 = vmatprep.subr.bf16.mxu1 %v2511_v59 }
 0x779   :  { %2514 = vmatpush3.bf16.msra.mxu1 %v2511_v59 }
 0x782   :  { %v1469_v61 = vpop.permute.xlu1 %1468 }
 0x783   :  { %v1467_v62 = vpop.permute.xlu0 %1466  ;;  %v1500_v51 = vsel %vm1498_vm5, %v1495_v2, %v1469_v61  ;;  %v66_v61 = vld [vmem:[#allocation5 + $0x78] sm:$0xff] }
 0x784   :  { %v1499_v3 = vsel %vm1498_vm5, %v1494_v43, %v1467_v62  ;;  %v67_v62 = vld [vmem:[#allocation5 + $0x80] sm:$0xff] }
 0x785   :  { %v2515_v43 = vpack.c.bf16 %v67_v62, %v66_v61 }
 0x786   :  { %v1485_v33 = vpop.permute.xlu1 %1484 }
 0x787   :  { %v1483_v6 = vpop.permute.xlu0 %1482  ;;  %v1505_v0 = vsel %vm1503_vm6, %v1500_v51, %v1485_v33  ;;  %2516 = vmatprep.subr.bf16.mxu1 %v2515_v43 }
 0x788   :  { %v1504_v37 = vsel %vm1503_vm6, %v1499_v3, %v1483_v6  ;;  %2518 = vmatpush3.bf16.msra.mxu1 %v2515_v43 }
 0x789   :  { %2365 = vmatprep.mubr.msk.f32.mxu0 %vm80_vm0, %v1504_v37 }
 0x78a   :  { %2366 = vmatmul.mubr.msk.f32.vlgmr.msra.gmra.mrb[16].mxu0 %vm80_vm0, %v1505_v0  ;;  %v1473_v1 = vpop.permute.xlu1 %1472 }
 0x78b   :  { %v1471_v7 = vpop.permute.xlu0 %1470  ;;  %v1502_v14 = vsel %vm1498_vm5, %v1497_v50, %v1473_v1 }
 0x78c   :  { %v1501_v63 = vsel %vm1498_vm5, %v1496_v10, %v1471_v7 }
 0x78e   :  { %v1489_v11 = vpop.permute.xlu1 %1488 }
 0x78f   :  { %v1487_v13 = vpop.permute.xlu0 %1486  ;;  %v1507_v4 = vsel %vm1503_vm6, %v1502_v14, %v1489_v11 }
 0x790   :  { %v1506_v15 = vsel %vm1503_vm6, %v1501_v63, %v1487_v13  ;;  %v2086_v63 = vld [vmem:[#allocation5 + $0xeb] ss:$0 sm:$0xff] }
 0x791   :  { %2368 = vmatprep.mubr.msk.f32.mxu0 %vm80_vm0, %v1506_v15 }
 0x792   :  { %2369 = vmatmul.mubr.msk.f32.gmra.mrb[18].mxu0 %vm80_vm0, %v1507_v4 }
 0x85d   :  { %v2367_v60 = vpop.f32.mrb[16].mxu0 }
 0x85e   :  { %v1606_v16 = vadd.f32 %v2730_v5, %v2367_v60  ;;  %v1586_v17 = vpop.f32.mrb[17].mxu0 }
 0x85f   :  { %v1605_v20 = vadd.f32 %v2731_v19, %v1586_v17 }
 0x860   :  { %v3185_v23 = vadd.f32 %v2085_v12, %v1606_v16 }
 0x861   :  { %v3187_v22 = vadd.f32 %v2085_v12, %v1605_v20 }
 0x862   :  { %v1620_v25 = vsel %vm80_vm0, %v3185_v23, 0.0 }
 0x863   :  { %1621 = vadd.xlane.f32.xlu1 %v1620_v25  ;;  %v1617_v26 = vsel %vm80_vm0, %v3187_v22, 0.0 }
 0x864   :  { %1618 = vadd.xlane.f32.xlu0 %v1617_v26 }
 0x865   :  { %v2370_v8 = vpop.f32.mrb[18].mxu0 }
 0x866   :  { %v1596_v21 = vpop.f32.mrb[19].mxu0  ;;  %v1608_v28 = vadd.f32 %v2732_v29, %v2370_v8 }
 0x867   :  { %v1607_v18 = vadd.f32 %v2733_v30, %v1596_v21  ;;  %v68_v30 = vld [vmem:[#allocation5 + $0x88] sm:$0xff] }
 0x868   :  { %v3195_v9 = vadd.f32 %v2085_v12, %v1608_v28 }
 0x869   :  { %v3193_v31 = vadd.f32 %v2085_v12, %v1607_v18  ;;  %v2087_v12 = vld [vmem:[#allocation5 + $0xec] ss:$0 sm:$0xff]  ;;  %v69_v18 = vld [vmem:[#allocation5 + $0x90] sm:$0xff] }
 0x86a   :  { %v1626_v36 = vsel %vm80_vm0, %v3195_v9, 0.0 }
 0x86b   :  { %v1623_v35 = vsel %vm80_vm0, %v3193_v31, 0.0 }
 0x86c   :  { %1624 = vadd.xlane.f32.xlu0 %v1623_v35  ;;  %v2519_v35 = vpack.c.bf16 %v69_v18, %v68_v30 }
 0x86e   :  { %2520 = vmatprep.subr.bf16.mxu0 %v2519_v35 }
 0x86f   :  { %2522 = vmatpush3.bf16.msra.mxu0 %v2519_v35 }
 0x870   :  { %1627 = vadd.xlane.f32.xlu0 %v1626_v36  ;;  %v70_v36 = vld [vmem:[#allocation5 + $0x98] sm:$0xff] }
 0x8f0   :  { %v1622_v34 = vpop.xlane.xlu1 %1621 }
 0x8f1   :  { %v1630_v39 = vmul.f32 0.03125, %v1622_v34  ;;  %v1619_v38 = vpop.xlane.xlu0 %1618  ;;  %v71_v34 = vld [vmem:[#allocation5 + $0xa0] sm:$0xff] }
 0x8f2   :  { %v1629_v32 = vmul.f32 0.03125, %v1619_v38  ;;  %v72_v38 = vld [vmem:[#allocation5 + $0xa8] sm:$0xff] }
 0x8f3   :  { %v1634_v40 = vsub.f32 %v3185_v23, %v1630_v39  ;;  %v2523_v39 = vpack.c.bf16 %v71_v34, %v70_v36 }
 0x8f4   :  { %v1633_v41 = vsub.f32 %v3187_v22, %v1629_v32  ;;  %v73_v32 = vld [vmem:[#allocation5 + $0xb0] sm:$0xff] }
 0x8f5   :  { %v1638_v42 = vmul.f32 %v1634_v40, %v1634_v40  ;;  %2524 = vmatprep.subr.bf16.mxu0 %v2523_v39 }
 0x8f6   :  { %v1637_v27 = vmul.f32 %v1633_v41, %v1633_v41  ;;  %2526 = vmatpush3.bf16.msra.mxu0 %v2523_v39 }
 0x8f7   :  { %v1644_v44 = vsel %vm80_vm0, %v1638_v42, 0.0  ;;  %v75_v42 = vld [vmem:[#allocation5 + $0xc0] sm:$0xff] }
 0x8f8   :  { %1645 = vadd.xlane.f32.xlu1 %v1644_v44  ;;  %v1641_v45 = vsel %vm80_vm0, %v1637_v27, 0.0  ;;  %v2088_v44 = vld [vmem:[#allocation5 + $0xed] ss:$0 sm:$0xff] }
 0x8f9   :  { %1642 = vadd.xlane.f32.xlu0 %v1641_v45  ;;  %v1625_v46 = vpop.xlane.xlu0 %1624 }
 0x8fa   :  { %v1631_v47 = vmul.f32 0.03125, %v1625_v46 }
 0x8fc   :  { %v1635_v49 = vsub.f32 %v3193_v31, %v1631_v47 }
 0x8fd   :  { %v1628_v48 = vpop.xlane.xlu0 %1627 }
 0x8fe   :  { %v1632_v52 = vmul.f32 0.03125, %v1628_v48  ;;  %v1639_v53 = vmul.f32 %v1635_v49, %v1635_v49 }
 0x900   :  { %v1636_v24 = vsub.f32 %v3195_v9, %v1632_v52  ;;  %v1647_v54 = vsel %vm80_vm0, %v1639_v53, 0.0 }
 0x901   :  { %1648 = vadd.xlane.f32.xlu0 %v1647_v54 }
 0x902   :  { %v1640_v55 = vmul.f32 %v1636_v24, %v1636_v24 }
 0x904   :  { %v1650_v58 = vsel %vm80_vm0, %v1640_v55, 0.0 }
 0x905   :  { %1651 = vadd.xlane.f32.xlu1 %v1650_v58 }
 0x985   :  { %v1646_v33 = vpop.xlane.xlu1 %1645 }
 0x986   :  { %v1654_v2 = vmul.f32 0.03125, %v1646_v33  ;;  %v1643_v3 = vpop.xlane.xlu0 %1642 }
 0x987   :  { %v1653_v6 = vmul.f32 0.03125, %v1643_v3 }
 0x988   :  { %v1658_v51 = vadd.f32 1e-05, %v1654_v2 }
 0x989   :  { %v1657_v37 = vadd.f32 1e-05, %v1653_v6 }
 0x98a   :  { %2706 = vrsqrt.f32 %v1658_v51 }
 0x98b   :  { %2708 = vrsqrt.f32 %v1657_v37 }
 0x98e   :  { %v1649_v0 = vpop.xlane.xlu0 %1648 }
 0x98f   :  { %v1655_v1 = vmul.f32 0.03125, %v1649_v0 }
 0x991   :  { %v1659_v7 = vadd.f32 1e-05, %v1655_v1 }
 0x992   :  { %v1652_v10 = vpop.xlane.xlu1 %1651 }
 0x993   :  { %2710 = vrsqrt.f32 %v1659_v7  ;;  %v1656_v11 = vmul.f32 0.03125, %v1652_v10 }
 0x994   :  { %v2707_v50 = vpop.eup %2706 }
 0x995   :  { %v2709_v13 = vpop.eup %2708  ;;  %v1666_v14 = vmul.f32 %v2707_v50, %v1634_v40  ;;  %v1660_v15 = vadd.f32 1e-05, %v1656_v11  ;;  %v2527_v40 = vpack.c.bf16 %v73_v32, %v72_v38 }
 0x996   :  { %v1665_v4 = vmul.f32 %v2709_v13, %v1633_v41  ;;  %v74_v41 = vld [vmem:[#allocation5 + $0xb8] sm:$0xff] }
 0x997   :  { %2712 = vrsqrt.f32 %v1660_v15  ;;  %v1674_v60 = vmul.f32 %v2086_v63, %v1666_v14  ;;  %2528 = vmatprep.subr.bf16.mxu0 %v2527_v40  ;;  %v2531_v27 = vpack.c.bf16 %v75_v42, %v74_v41 }
 0x998   :  { %v1673_v5 = vmul.f32 %v2086_v63, %v1665_v4  ;;  %2530 = vmatpush3.bf16.msra.mxu0 %v2527_v40 }
 0x999   :  { %v1682_v17 = vadd.f32 %v2087_v12, %v1674_v60  ;;  %2532 = vmatprep.subr.bf16.mxu0 %v2531_v27 }
 0x99a   :  { %v1681_v16 = vadd.f32 %v2087_v12, %v1673_v5 }
 0x99c   :  { %2379 = vmatprep.mubr.msk.f32.mxu1 %vm80_vm0, %v1681_v16  ;;  %2534 = vmatpush3.bf16.msra.mxu0 %v2531_v27 }
 0x99d   :  { %v2711_v19 = vpop.eup %2710  ;;  %2380 = vmatmul.mubr.msk.f32.vlgmr.msra.gmra.mrb[24].mxu1 %vm80_vm0, %v1682_v17 }
 0x99e   :  { %v1667_v20 = vmul.f32 %v2711_v19, %v1635_v49 }
 0x9a0   :  { %v1675_v25 = vmul.f32 %v2086_v63, %v1667_v20 }
 0x9a1   :  { %v2713_v26 = vpop.eup %2712 }
 0x9a2   :  { %v1683_v8 = vadd.f32 %v2087_v12, %v1675_v25  ;;  %v1668_v21 = vmul.f32 %v2713_v26, %v1636_v24 }
 0x9a4   :  { %2382 = vmatprep.mubr.msk.f32.mxu1 %vm80_vm0, %v1683_v8  ;;  %v1676_v29 = vmul.f32 %v2086_v63, %v1668_v21 }
 0x9a6   :  { %v1684_v28 = vadd.f32 %v2087_v12, %v1676_v29 }
 0x9a8   :  { %2383 = vmatmul.mubr.msk.f32.gmra.mrb[26].mxu1 %vm80_vm0, %v1684_v28 }
 0xa70   :  { %v2381_v45 = vpop.f32.mrb[24].mxu1 }
 0xa71   :  { %v3213_v46 = vadd.f32 %v2381_v45, %v2088_v44  ;;  %v1767_v47 = vpop.f32.mrb[25].mxu1 }
 0xa72   :  { %v3215_v49 = vadd.f32 %v2088_v44, %v1767_v47 }
 0xa73   :  { %v3218_v48 = vmul.f32 0.70710677, %v3213_v46 }
 0xa74   :  { %v3221_v52 = vmul.f32 0.70710677, %v3215_v49 }
 0xa75   :  { %v1795_v53 = vand.u32 2147483647, %v3218_v48  ;;  %vm1875_vm7 = vcmp.ge.f32.partialorder %v3218_v48, 0.0 }
 0xa76   :  { %v1794_v24 = vand.u32 2147483647, %v3221_v52  ;;  %vm1874_vm8 = vcmp.ge.f32.partialorder %v3221_v52, 0.0 }
 0xa77   :  { %v1799_v54 = vmul.f32 0.3275911, %v1795_v53  ;;  %v1851_v3 = vsub.f32 0.0, %v1795_v53 }
 0xa78   :  { %v1798_v55 = vmul.f32 0.3275911, %v1794_v24  ;;  %v1850_v51 = vsub.f32 0.0, %v1794_v24 }
 0xa79   :  { %v1803_v58 = vadd.f32 1.0, %v1799_v54  ;;  %v1855_v10 = vmul.f32 %v1851_v3, %v1795_v53 }
 0xa7a   :  { %v1802_v56 = vadd.f32 1.0, %v1798_v55  ;;  %v1854_v13 = vmul.f32 %v1850_v51, %v1794_v24 }
 0xa7b   :  { %2714 = vrcp.f32 %v1803_v58  ;;  %v2384_v57 = vpop.f32.mrb[26].mxu1  ;;  %v1860_v4 = vmul.f32 1.442695, %v1855_v10 }
 0xa7c   :  { %2716 = vrcp.f32 %v1802_v56  ;;  %v3225_v59 = vadd.f32 %v2384_v57, %v2088_v44  ;;  %v1777_v61 = vpop.f32.mrb[27].mxu1  ;;  %v1858_v5 = vmul.f32 1.442695, %v1854_v13 }
 0xa7d   :  { %v3227_v62 = vadd.f32 %v2088_v44, %v1777_v61 }
 0xa7e   :  { %v3230_v43 = vmul.f32 0.70710677, %v3225_v59 }
 0xa7f   :  { %v3233_v33 = vmul.f32 0.70710677, %v3227_v62 }
 0xa80   :  { %v1797_v2 = vand.u32 2147483647, %v3230_v43  ;;  %vm1877_vm10 = vcmp.ge.f32.partialorder %v3230_v43, 0.0 }
 0xa81   :  { %v1796_v6 = vand.u32 2147483647, %v3233_v33  ;;  %vm1876_vm11 = vcmp.ge.f32.partialorder %v3233_v33, 0.0 }
 0xa82   :  { %v1801_v37 = vmul.f32 0.3275911, %v1797_v2  ;;  %v1853_v19 = vsub.f32 0.0, %v1797_v2 }
 0xa83   :  { %v1800_v0 = vmul.f32 0.3275911, %v1796_v6  ;;  %v1852_v25 = vsub.f32 0.0, %v1796_v6 }
 0xa84   :  { %v1805_v1 = vadd.f32 1.0, %v1801_v37  ;;  %v1857_v28 = vmul.f32 %v1853_v19, %v1797_v2 }
 0xa85   :  { %v2715_v7 = vpop.eup %2714  ;;  %v1804_v11 = vadd.f32 1.0, %v1800_v0  ;;  %v1856_v36 = vmul.f32 %v1852_v25, %v1796_v6 }
 0xa86   :  { %v2717_v50 = vpop.eup %2716  ;;  %v1815_v63 = vmul.f32 1.0614054, %v2715_v7  ;;  %2718 = vrcp.f32 %v1805_v1  ;;  %v1864_v41 = vmul.f32 1.442695, %v1857_v28 }
 0xa87   :  { %v1814_v14 = vmul.f32 1.0614054, %v2717_v50  ;;  %2720 = vrcp.f32 %v1804_v11  ;;  %v1862_v45 = vmul.f32 1.442695, %v1856_v36 }
 0xa88   :  { %v2094_v15 = vadd.f32 -1.4531521, %v1815_v63  ;;  %2722 = vpow2.f32 %v1860_v4 }
 0xa89   :  { %v2093_v12 = vadd.f32 -1.4531521, %v1814_v14  ;;  %2724 = vpow2.f32 %v1858_v5 }
 0xa8a   :  { %v1823_v60 = vmul.f32 %v2715_v7, %v2094_v15  ;;  %2726 = vpow2.f32 %v1864_v41  ;;  %v1786_v15 = vmul.f32 0.5, %v3215_v49 }
 0xa8b   :  { %v1822_v16 = vmul.f32 %v2717_v50, %v2093_v12  ;;  %2728 = vpow2.f32 %v1862_v45 }
 0xa8c   :  { %v1827_v17 = vadd.f32 1.4214138, %v1823_v60  ;;  %v1787_v60 = vmul.f32 0.5, %v3213_v46 }
 0xa8d   :  { %v1826_v20 = vadd.f32 1.4214138, %v1822_v16 }
 0xa8e   :  { %v1831_v26 = vmul.f32 %v2715_v7, %v1827_v17 }
 0xa8f   :  { %v1830_v8 = vmul.f32 %v2717_v50, %v1826_v20 }
 0xa90   :  { %v2719_v21 = vpop.eup %2718  ;;  %v2098_v29 = vadd.f32 -0.28449672, %v1831_v26 }
 0xa91   :  { %v2721_v30 = vpop.eup %2720  ;;  %v2097_v18 = vadd.f32 -0.28449672, %v1830_v8  ;;  %v1817_v35 = vmul.f32 1.0614054, %v2719_v21 }
 0xa92   :  { %v1839_v34 = vmul.f32 %v2715_v7, %v2098_v29  ;;  %v1816_v39 = vmul.f32 1.0614054, %v2721_v30  ;;  %v2723_v24 = vpop.eup %2722 }
 0xa93   :  { %v1838_v38 = vmul.f32 %v2717_v50, %v2097_v18  ;;  %v2096_v32 = vadd.f32 -1.4531521, %v1817_v35  ;;  %v2725_v58 = vpop.eup %2724  ;;  %v1789_v35 = vmul.f32 0.5, %v3225_v59 }
 0xa94   :  { %v1843_v40 = vadd.f32 0.2548296, %v1839_v34  ;;  %v2095_v42 = vadd.f32 -1.4531521, %v1816_v39  ;;  %v2727_v16 = vpop.eup %2726  ;;  %v2101_v39 = vld [vmem:[#allocation5 + $0xee] ss:$0 sm:$0xff] }
 0xa95   :  { %v1842_v27 = vadd.f32 0.2548296, %v1838_v38  ;;  %v1825_v44 = vmul.f32 %v2719_v21, %v2096_v32  ;;  %v2729_v19 = vpop.eup %2728 }
 0xa96   :  { %v1847_v47 = vmul.f32 %v2715_v7, %v1843_v40  ;;  %v1824_v53 = vmul.f32 %v2721_v30, %v2095_v42 }
 0xa97   :  { %v1846_v54 = vmul.f32 %v2717_v50, %v1842_v27  ;;  %v1829_v55 = vadd.f32 1.4214138, %v1825_v44 }
 0xa98   :  { %v1867_v56 = vmul.f32 %v2723_v24, %v1847_v47  ;;  %v1828_v57 = vadd.f32 1.4214138, %v1824_v53 }
 0xa99   :  { %v1866_v61 = vmul.f32 %v2725_v58, %v1846_v54  ;;  %v1833_v2 = vmul.f32 %v2719_v21, %v1829_v55 }
 0xa9a   :  { %v1871_v3 = vsub.f32 1.0, %v1867_v56  ;;  %v1832_v6 = vmul.f32 %v2721_v30, %v1828_v57 }
 0xa9b   :  { %v1870_v51 = vsub.f32 1.0, %v1866_v61  ;;  %v2100_v37 = vadd.f32 -0.28449672, %v1833_v2 }
 0xa9c   :  { %v1879_v0 = vsub.f32 0.0, %v1871_v3  ;;  %v2099_v1 = vadd.f32 -0.28449672, %v1832_v6 }
 0xa9d   :  { %v1878_v7 = vsub.f32 0.0, %v1870_v51  ;;  %v1841_v10 = vmul.f32 %v2719_v21, %v2100_v37 }
 0xa9e   :  { %v1883_v11 = vsel %vm1875_vm7, %v1871_v3, %v1879_v0  ;;  %v1840_v50 = vmul.f32 %v2721_v30, %v2099_v1 }
 0xa9f   :  { %v1887_v63 = vadd.f32 1.0, %v1883_v11  ;;  %v1882_v13 = vsel %vm1874_vm8, %v1870_v51, %v1878_v7  ;;  %v1845_v14 = vadd.f32 0.2548296, %v1841_v10 }
 0xaa0   :  { %v1886_v4 = vadd.f32 1.0, %v1882_v13  ;;  %v1844_v12 = vadd.f32 0.2548296, %v1840_v50 }
 0xaa1   :  { %v1849_v5 = vmul.f32 %v2719_v21, %v1845_v14  ;;  %v1891_v20 = vmul.f32 %v1887_v63, %v1787_v60 }
 0xaa2   :  { %v1890_v17 = vmul.f32 %v1886_v4, %v1786_v15  ;;  %v1848_v48 = vmul.f32 %v2721_v30, %v1844_v12  ;;  %v1788_v30 = vmul.f32 0.5, %v3227_v62 }
 0xaa3   :  { %v1869_v25 = vmul.f32 %v2727_v16, %v1849_v5 }
 0xaa4   :  { %v1868_v26 = vmul.f32 %v2729_v19, %v1848_v48  ;;  %2401 = vmatprep.mubr.msk.f32.mxu0 %vm1898_vm9, %v1890_v17 }
 0xaa5   :  { %v1873_v52 = vsub.f32 1.0, %v1869_v25  ;;  %2402 = vmatmul.mubr.msk.f32.vlgmr.msra.gmra.mrb[20].mxu0 %vm1898_vm9, %v1891_v20 }
 0xaa6   :  { %v1872_v8 = vsub.f32 1.0, %v1868_v26 }
 0xaa7   :  { %v1881_v49 = vsub.f32 0.0, %v1873_v52 }
 0xaa8   :  { %v1880_v29 = vsub.f32 0.0, %v1872_v8 }
 0xaa9   :  { %v1885_v46 = vsel %vm1877_vm10, %v1873_v52, %v1881_v49 }
 0xaaa   :  { %v1889_v21 = vadd.f32 1.0, %v1885_v46  ;;  %v1884_v28 = vsel %vm1876_vm11, %v1872_v8, %v1880_v29 }
 0xaab   :  { %v1888_v18 = vadd.f32 1.0, %v1884_v28 }
 0xaac   :  { %v1893_v34 = vmul.f32 %v1889_v21, %v1789_v35 }
 0xaad   :  { %v1892_v36 = vmul.f32 %v1888_v18, %v1788_v30 }
 0xaaf   :  { %2404 = vmatprep.mubr.msk.f32.mxu0 %vm1898_vm9, %v1892_v36 }
 0xab0   :  { %2405 = vmatmul.mubr.msk.f32.gmra.mrb[22].mxu0 %vm1898_vm9, %v1893_v34 }
 0xb78   :  { %v2403_v38 = vpop.f32.mrb[20].mxu0 }
 0xb79   :  { %v1983_v43 = vadd.f32 %v2403_v38, %v2101_v39  ;;  %v1977_v32 = vpop.f32.mrb[21].mxu0 }
 0xb7a   :  { %v1978_v40 = vadd.f32 %v2101_v39, %v1977_v32 }
 0xb7b   :  { %v1997_v33 = vadd.f32 %v1983_v43, %v3185_v23 }
 0xb7c   :  { %v1996_v41 = vadd.f32 %v1978_v40, %v3187_v22 }
 0xb7d   :  { %2001 = vst.msk [vmem:[#allocation7 + $0x8] sm:$0xff] %vm80_vm0, %v1997_v33 }
 0xb7e   :  { %2000 = vst.msk [vmem:[#allocation7] sm:$0xff] %vm80_vm0, %v1996_v41 }
 0xb83   :  { %v2406_v59 = vpop.f32.mrb[22].mxu0 }
 0xb84   :  { %v1993_v62 = vadd.f32 %v2406_v59, %v2101_v39  ;;  %v1987_v42 = vpop.f32.mrb[23].mxu0 }
 0xb85   :  { %v1988_v27 = vadd.f32 %v2101_v39, %v1987_v42 }
 0xb86   :  { %v1999_v44 = vadd.f32 %v1993_v62, %v3195_v9 }
 0xb87   :  { %v1998_v45 = vadd.f32 %v1988_v27, %v3193_v31 }
 0xb88   :  { %2003 = vst.msk [vmem:[#allocation7 + $0x18] sm:$0xff] %vm80_vm0, %v1999_v44 }
 0xb89   :  { %2002 = vst.msk [vmem:[#allocation7 + $0x10] sm:$0xff] %vm80_vm0, %v1998_v45 }
 0xb8a   :  { %2789 = shalt.err (!%p2786_p6)
}
 0xb8b   :  { %s2790_s26 = scalar_lea.hbm %s3274_s2, 512 }
 0xb8c   :  { %p2791_p7 = scmp.ne.s32.totalorder %s3274_s2, %s2790_s26  ;;  %p2794_p8 = scmp.lt.u32.totalorder %s2790_s26, %s3274_s2 }
 0xb8e   :  { %p2796_p9 = pnand %p2794_p8, %p2791_p7 }
 0xb90   :  { %2799 = shalt.err (!%p2796_p9)
}
 0xb91   :  { %2015 = dma.vmem_to_hbm [thread:$0]  %s2010_s22, 512, %s3274_s2, [#allocation4], %s2807_s19, %s2807_s19, %s2808_s20  }
 0xb92   :  { %2804 = dma.done.wait [#allocation4], 512  }
 0xb93   :  { %2805 = vsyncadd [#allocation4], 4294966784 }
 0xb94   :  { %2019 = vsyncpa [#allocation3], 1 }
 0xb95   :  { %2020 = vsyncpa [#allocation6], 1 }
 0xb96   :  { %2021 = vsyncpa [#allocation4], 1 }

</bundles_post_ra>
